<compile_context>
chip_gen: v6e
topology: v6e:2x2x1
jax: 0.10.0
libtpu: 0.0.40
codegen_flags: <defaults>
</compile_context>

<pallas_src>
import jax
import jax.numpy as jnp
from jax import lax
from jax.experimental import pallas as pl
from jax.experimental.pallas import tpu as pltpu

_VMEM = pl.BlockSpec(memory_space=pltpu.MemorySpace.VMEM)


# ------------------------------- kernel ------------------------------------- #

def _spatial_block_kernel(x_ref, w1_ref, b1_ref, w2_ref, b2_ref,
                          wih1_ref, whh1_ref, bg1_ref,
                          wih2_ref, whh2_ref, bg2_ref,
                          w3_ref, b3_ref, o_ref):
    """Fused forward.

    x_ref   : (T*B, D) time-major flattened input (rows = t*B + b), f32
    w1_ref  : (D, D)   = (W1 @ kron(S, I_f)).T          b1_ref : (1, D)
    w2_ref  : (D, D)   = (W2 @ kron(S, I_f)).T          b2_ref : (1, D)
    wih*_ref: (D, 4D)  = W_ih.T (gates i|f|g|o)         whh*_ref: (D, 4D) = W_hh.T
    bg*_ref : (1, 4D)  = b_ih + b_hh
    w3_ref  : (D, D)   = W3.T                           b3_ref : (1, D)
    o_ref   : (B, D)   output (last LSTM2 step -> linear3 -> relu)
    """
    TB, D = x_ref.shape
    B, _ = o_ref.shape
    T = TB // B
    D4 = 4 * D
    f32 = jnp.float32

    # ---- fused pre-LSTM chain (spatial folded into W1'/W2'): stays in VMEM ----
    h = jnp.dot(x_ref[...], w1_ref[...], preferred_element_type=f32) + b1_ref[...]
    h = jnp.maximum(h, 0.0)
    h = jnp.dot(h, w2_ref[...], preferred_element_type=f32) + b2_ref[...]
    h = jnp.maximum(h, 0.0)                                   # (T*B, D), time-major

    # ---- layer-1 input projection for all time steps, hoisted out of the loop ----
    xproj = jnp.dot(h, wih1_ref[...], preferred_element_type=f32) + bg1_ref[...]   # (T*B, 4D)

    # Hoist weight reads & the layer-2 bias broadcast out of the recurrence
    # (JAX does not CSE broadcast_in_dim; an in-loop broadcast would repeat T times).
    whh1 = whh1_ref[...]
    wih2 = wih2_ref[...]
    whh2 = whh2_ref[...]
    bg2 = jnp.broadcast_to(bg2_ref[...], (B, D4))

    def lstm_cell(gates, c):
        # PyTorch gate order: i, f, g, o
        i_g = jax.nn.sigmoid(gates[:, 0 * D:1 * D])
        f_g = jax.nn.sigmoid(gates[:, 1 * D:2 * D])
        g_g = jnp.tanh(gates[:, 2 * D:3 * D])
        o_g = jax.nn.sigmoid(gates[:, 3 * D:4 * D])
        c_new = f_g * c + i_g * g_g
        h_new = o_g * jnp.tanh(c_new)
        return h_new, c_new

    z = jnp.zeros((B, D), f32)
    h1, c1, h2, c2 = z, z, z, z

    # Fully unrolled recurrence (T static & small): per step, layer 1 only needs
    # its h-recurrent matmul (input projection was hoisted); layer 2 does its two
    # concatenated-gate matmuls.  Sigmoid/tanh go to the EUP, elementwise gate
    # math to the VPU, so the unrolled steps can overlap MXU pushes.
    for t in range(T):
        x1 = xproj[t * B:(t + 1) * B, :]                       # (B, 4D), static slice
        g1 = x1 + jnp.dot(h1, whh1, preferred_element_type=f32)
        h1, c1 = lstm_cell(g1, c1)
        g2 = (jnp.dot(h1, wih2, preferred_element_type=f32)
              + jnp.dot(h2, whh2, preferred_element_type=f32) + bg2)
        h2, c2 = lstm_cell(g2, c2)

    y = jnp.dot(h2, w3_ref[...], preferred_element_type=f32) + b3_ref[...]
    o_ref[...] = jnp.maximum(y, 0.0)


# ------------------------------- wrapper ------------------------------------ #

def spatial_block_forward(x, kp):
    """x: (B, T, node, feature) f32 -> (B, node*feature) f32."""
    B, T, n, f = x.shape
    D = n * f
    # Time-major flatten: rows are order-agnostic for the row-wise linear layers,
    # and the LSTM then reads time step t as a contiguous (B, ...) row slab with
    # no in-kernel transpose.
    x_tm = x.transpose(1, 0, 2, 3).reshape(T * B, D)
    return pl.pallas_call(
        _spatial_block_kernel,
        out_shape=jax.ShapeDtypeStruct((B, D), jnp.float32),
        in_specs=[_VMEM] * 13,
        out_specs=_VMEM,
    )(x_tm,
      kp["W1p_T"], kp["b1"], kp["W2p_T"], kp["b2"],
      kp["Wih1"], kp["Whh1"], kp["bg1"],
      kp["Wih2"], kp["Whh2"], kp["bg2"],
      kp["W3_T"], kp["b3"])


# --------------------------- params & reference ------------------------------ #

def init_params(key, n, feature_dim):
    """Raw (PyTorch-layout) parameters."""
    D = n * feature_dim
    ks = jax.random.split(key, 16)
    bound = 1.0 / jnp.sqrt(jnp.float32(D))

    def unif(kk, shape):
        return jax.random.uniform(kk, shape, jnp.float32, -bound, bound)

    S = jax.random.uniform(ks[0], (n, n), jnp.float32)
    S = S / jnp.sum(S, axis=1, keepdims=True)       # synthetic row-normalized spatial matrix

    return {
        "S": S,
        "W1": unif(ks[1], (D, D)), "b1": unif(ks[2], (D,)),
        "W2": unif(ks[3], (D, D)), "b2": unif(ks[4], (D,)),
        "W_ih1": unif(ks[5], (4 * D, D)), "W_hh1": unif(ks[6], (4 * D, D)),
        "b_ih1": unif(ks[7], (4 * D,)), "b_hh1": unif(ks[8], (4 * D,)),
        "W_ih2": unif(ks[9], (4 * D, D)), "W_hh2": unif(ks[10], (4 * D, D)),
        "b_ih2": unif(ks[11], (4 * D,)), "b_hh2": unif(ks[12], (4 * D,)),
        "W3": unif(ks[13], (D, D)), "b3": unif(ks[14], (D,)),
    }


def prepare_kernel_params(p, n, feature_dim):
    """Offline folding / transposition / gate-concatenation for the kernel."""
    D = n * feature_dim
    # vec layout of reshape(B,T,node*feature) is (node outer, feature inner)
    # -> S acting on the node axis is kron(S, I_f) on the flattened vector.
    K = jnp.kron(p["S"], jnp.eye(feature_dim, dtype=jnp.float32))          # (D, D)
    return {
        "W1p_T": (p["W1"] @ K).T, "b1": p["b1"].reshape(1, D),
        "W2p_T": (p["W2"] @ K).T, "b2": p["b2"].reshape(1, D),
        "Wih1": p["W_ih1"].T, "Whh1": p["W_hh1"].T,
        "bg1": (p["b_ih1"] + p["b_hh1"]).reshape(1, 4 * D),
        "Wih2": p["W_ih2"].T, "Whh2": p["W_hh2"].T,
        "bg2": (p["b_ih2"] + p["b_hh2"]).reshape(1, 4 * D),
        "W3_T": p["W3"].T, "b3": p["b3"].reshape(1, D),
    }


def reference_forward(x, p):
    """Plain-JAX replica of the original (unfolded) PyTorch forward."""
    B, T, n, f = x.shape
    D = n * f
    out = jnp.einsum('ij,btjf->btif', p["S"], x).reshape(B, T, D)
    out = jax.nn.relu(out @ p["W1"].T + p["b1"])
    out = jnp.einsum('ij,btjf->btif', p["S"], out.reshape(B, T, n, f)).reshape(B, T, D)
    out = jax.nn.relu(out @ p["W2"].T + p["b2"])
    seq = out.transpose(1, 0, 2)                                # (T, B, D)

    def run_lstm(s, wih, whh, bih, bhh):
        def step(carry, x_t):
            h, c = carry
            gates = x_t @ wih.T + bih + h @ whh.T + bhh
            i_g = jax.nn.sigmoid(gates[:, 0:D])
            f_g = jax.nn.sigmoid(gates[:, D:2 * D])
            g_g = jnp.tanh(gates[:, 2 * D:3 * D])
            o_g = jax.nn.sigmoid(gates[:, 3 * D:4 * D])
            c = f_g * c + i_g * g_g
            h = o_g * jnp.tanh(c)
            return (h, c), h
        z = jnp.zeros((s.shape[1], D), jnp.float32)
        _, hs = lax.scan(step, (z, z), s)
        return hs

    h1 = run_lstm(seq, p["W_ih1"], p["W_hh1"], p["b_ih1"], p["b_hh1"])
    h2 = run_lstm(h1, p["W_ih2"], p["W_hh2"], p["b_ih2"], p["b_hh2"])
    return jax.nn.relu(h2[-1] @ p["W3"].T + p["b3"])


# --------------------------------- main -------------------------------------- #

if __name__ == "__main__":
    B, T, n, f = 2, 8, 4, 4            # batch, time, node, feature_dim -> D = 16
    key = jax.random.PRNGKey(0)
    kx, kp = jax.random.split(key)
    x = jax.random.normal(kx, (B, T, n, f), jnp.float32)

    raw = init_params(kp, n, f)
    kparams = prepare_kernel_params(raw, n, f)

    out = jax.jit(spatial_block_forward)(x, kparams)
    out = jax.block_until_ready(out)

    ref = reference_forward(x, raw)
    assert out.shape == (B, n * f), out.shape
    assert jnp.allclose(out, ref, atol=1e-2, rtol=1e-2), float(jnp.max(jnp.abs(out - ref)))
    print("KERNEL_OK")
</pallas_src>

<mosaic_0001>
module attributes {stable_mosaic.version = 11 : i64} {
  func.func @_spatial_block_kernel(%arg0: memref<16x16xf32, #tpu.memory_space<vmem>>, %arg1: memref<16x16xf32, #tpu.memory_space<vmem>>, %arg2: memref<1x16xf32, #tpu.memory_space<vmem>>, %arg3: memref<16x16xf32, #tpu.memory_space<vmem>>, %arg4: memref<1x16xf32, #tpu.memory_space<vmem>>, %arg5: memref<16x64xf32, #tpu.memory_space<vmem>>, %arg6: memref<16x64xf32, #tpu.memory_space<vmem>>, %arg7: memref<1x64xf32, #tpu.memory_space<vmem>>, %arg8: memref<16x64xf32, #tpu.memory_space<vmem>>, %arg9: memref<16x64xf32, #tpu.memory_space<vmem>>, %arg10: memref<1x64xf32, #tpu.memory_space<vmem>>, %arg11: memref<16x16xf32, #tpu.memory_space<vmem>>, %arg12: memref<1x16xf32, #tpu.memory_space<vmem>>, %arg13: memref<2x16xf32, #tpu.memory_space<vmem>>) attributes {dimension_semantics = [], scalar_prefetch = 0 : i64, scratch_operands = 0 : i64, tpu.core_type = #tpu.core_type<tc>} {
    %c0 = arith.constant 0 : index
    %c0_0 = arith.constant 0 : index
    %0 = vector.load %arg0[%c0, %c0_0] : memref<16x16xf32, #tpu.memory_space<vmem>>, vector<16x16xf32>
    %c0_1 = arith.constant 0 : index
    %c0_2 = arith.constant 0 : index
    %1 = vector.load %arg1[%c0_1, %c0_2] : memref<16x16xf32, #tpu.memory_space<vmem>>, vector<16x16xf32>
    %cst = arith.constant dense<0.000000e+00> : vector<16x16xf32>
    %2 = tpu.matmul %0, %1, %cst {dimension_numbers = #tpu.dot_dimension_numbers<[1], [0], [0], [1], [0, 0, 1, 1], [], []>} : vector<16x16xf32>, vector<16x16xf32>, vector<16x16xf32> -> vector<16x16xf32>
    %c0_3 = arith.constant 0 : index
    %c0_4 = arith.constant 0 : index
    %3 = vector.load %arg2[%c0_3, %c0_4] : memref<1x16xf32, #tpu.memory_space<vmem>>, vector<1x16xf32>
    %4 = vector.broadcast %3 : vector<1x16xf32> to vector<16x16xf32>
    %5 = arith.addf %2, %4 : vector<16x16xf32>
    %cst_5 = arith.constant 0.000000e+00 : f32
    %6 = vector.broadcast %cst_5 : f32 to vector<16x16xf32>
    %7 = arith.maximumf %5, %6 : vector<16x16xf32>
    %c0_6 = arith.constant 0 : index
    %c0_7 = arith.constant 0 : index
    %8 = vector.load %arg3[%c0_6, %c0_7] : memref<16x16xf32, #tpu.memory_space<vmem>>, vector<16x16xf32>
    %cst_8 = arith.constant dense<0.000000e+00> : vector<16x16xf32>
    %9 = tpu.matmul %7, %8, %cst_8 {dimension_numbers = #tpu.dot_dimension_numbers<[1], [0], [0], [1], [0, 0, 1, 1], [], []>} : vector<16x16xf32>, vector<16x16xf32>, vector<16x16xf32> -> vector<16x16xf32>
    %c0_9 = arith.constant 0 : index
    %c0_10 = arith.constant 0 : index
    %10 = vector.load %arg4[%c0_9, %c0_10] : memref<1x16xf32, #tpu.memory_space<vmem>>, vector<1x16xf32>
    %11 = vector.broadcast %10 : vector<1x16xf32> to vector<16x16xf32>
    %12 = arith.addf %9, %11 : vector<16x16xf32>
    %cst_11 = arith.constant 0.000000e+00 : f32
    %13 = vector.broadcast %cst_11 : f32 to vector<16x16xf32>
    %14 = arith.maximumf %12, %13 : vector<16x16xf32>
    %c0_12 = arith.constant 0 : index
    %c0_13 = arith.constant 0 : index
    %15 = vector.load %arg5[%c0_12, %c0_13] : memref<16x64xf32, #tpu.memory_space<vmem>>, vector<16x64xf32>
    %cst_14 = arith.constant dense<0.000000e+00> : vector<16x64xf32>
    %16 = tpu.matmul %14, %15, %cst_14 {dimension_numbers = #tpu.dot_dimension_numbers<[1], [0], [0], [1], [0, 0, 1, 1], [], []>} : vector<16x16xf32>, vector<16x64xf32>, vector<16x64xf32> -> vector<16x64xf32>
    %c0_15 = arith.constant 0 : index
    %c0_16 = arith.constant 0 : index
    %17 = vector.load %arg7[%c0_15, %c0_16] : memref<1x64xf32, #tpu.memory_space<vmem>>, vector<1x64xf32>
    %18 = vector.broadcast %17 : vector<1x64xf32> to vector<16x64xf32>
    %19 = arith.addf %16, %18 : vector<16x64xf32>
    %c0_17 = arith.constant 0 : index
    %c0_18 = arith.constant 0 : index
    %20 = vector.load %arg6[%c0_17, %c0_18] : memref<16x64xf32, #tpu.memory_space<vmem>>, vector<16x64xf32>
    %c0_19 = arith.constant 0 : index
    %c0_20 = arith.constant 0 : index
    %21 = vector.load %arg8[%c0_19, %c0_20] : memref<16x64xf32, #tpu.memory_space<vmem>>, vector<16x64xf32>
    %c0_21 = arith.constant 0 : index
    %c0_22 = arith.constant 0 : index
    %22 = vector.load %arg9[%c0_21, %c0_22] : memref<16x64xf32, #tpu.memory_space<vmem>>, vector<16x64xf32>
    %c0_23 = arith.constant 0 : index
    %c0_24 = arith.constant 0 : index
    %23 = vector.load %arg10[%c0_23, %c0_24] : memref<1x64xf32, #tpu.memory_space<vmem>>, vector<1x64xf32>
    %24 = vector.shape_cast %23 : vector<1x64xf32> to vector<1x64xf32>
    %25 = vector.broadcast %24 : vector<1x64xf32> to vector<2x64xf32>
    %cst_25 = arith.constant 0.000000e+00 : f32
    %26 = vector.broadcast %cst_25 : f32 to vector<2x16xf32>
    %27 = vector.extract_strided_slice %19 {offsets = [0, 0], sizes = [2, 64], strides = [1, 1]} : vector<16x64xf32> to vector<2x64xf32>
    %cst_26 = arith.constant dense<0.000000e+00> : vector<2x64xf32>
    %28 = tpu.matmul %26, %20, %cst_26 {dimension_numbers = #tpu.dot_dimension_numbers<[1], [0], [0], [1], [0, 0, 1, 1], [], []>} : vector<2x16xf32>, vector<16x64xf32>, vector<2x64xf32> -> vector<2x64xf32>
    %29 = arith.addf %27, %28 : vector<2x64xf32>
    %30 = vector.extract_strided_slice %29 {offsets = [0, 0], sizes = [2, 16], strides = [1, 1]} : vector<2x64xf32> to vector<2x16xf32>
    %31 = arith.negf %30 : vector<2x16xf32>
    %32 = math.exp %31 : vector<2x16xf32>
    %cst_27 = arith.constant 1.000000e+00 : f32
    %33 = vector.broadcast %cst_27 : f32 to vector<2x16xf32>
    %34 = arith.addf %33, %32 : vector<2x16xf32>
    %35 = arith.divf %33, %34 : vector<2x16xf32>
    %36 = vector.extract_strided_slice %29 {offsets = [0, 16], sizes = [2, 16], strides = [1, 1]} : vector<2x64xf32> to vector<2x16xf32>
    %37 = arith.negf %36 : vector<2x16xf32>
    %38 = math.exp %37 : vector<2x16xf32>
    %cst_28 = arith.constant 1.000000e+00 : f32
    %39 = vector.broadcast %cst_28 : f32 to vector<2x16xf32>
    %40 = arith.addf %39, %38 : vector<2x16xf32>
    %41 = arith.divf %39, %40 : vector<2x16xf32>
    %42 = vector.extract_strided_slice %29 {offsets = [0, 32], sizes = [2, 16], strides = [1, 1]} : vector<2x64xf32> to vector<2x16xf32>
    %43 = math.tanh %42 : vector<2x16xf32>
    %44 = vector.extract_strided_slice %29 {offsets = [0, 48], sizes = [2, 16], strides = [1, 1]} : vector<2x64xf32> to vector<2x16xf32>
    %45 = arith.negf %44 : vector<2x16xf32>
    %46 = math.exp %45 : vector<2x16xf32>
    %cst_29 = arith.constant 1.000000e+00 : f32
    %47 = vector.broadcast %cst_29 : f32 to vector<2x16xf32>
    %48 = arith.addf %47, %46 : vector<2x16xf32>
    %49 = arith.divf %47, %48 : vector<2x16xf32>
    %50 = arith.mulf %41, %26 : vector<2x16xf32>
    %51 = arith.mulf %35, %43 : vector<2x16xf32>
    %52 = arith.addf %50, %51 : vector<2x16xf32>
    %53 = math.tanh %52 : vector<2x16xf32>
    %54 = arith.mulf %49, %53 : vector<2x16xf32>
    %cst_30 = arith.constant dense<0.000000e+00> : vector<2x64xf32>
    %55 = tpu.matmul %54, %21, %cst_30 {dimension_numbers = #tpu.dot_dimension_numbers<[1], [0], [0], [1], [0, 0, 1, 1], [], []>} : vector<2x16xf32>, vector<16x64xf32>, vector<2x64xf32> -> vector<2x64xf32>
    %cst_31 = arith.constant dense<0.000000e+00> : vector<2x64xf32>
    %56 = tpu.matmul %26, %22, %cst_31 {dimension_numbers = #tpu.dot_dimension_numbers<[1], [0], [0], [1], [0, 0, 1, 1], [], []>} : vector<2x16xf32>, vector<16x64xf32>, vector<2x64xf32> -> vector<2x64xf32>
    %57 = arith.addf %55, %56 : vector<2x64xf32>
    %58 = arith.addf %57, %25 : vector<2x64xf32>
    %59 = vector.extract_strided_slice %58 {offsets = [0, 0], sizes = [2, 16], strides = [1, 1]} : vector<2x64xf32> to vector<2x16xf32>
    %60 = arith.negf %59 : vector<2x16xf32>
    %61 = math.exp %60 : vector<2x16xf32>
    %cst_32 = arith.constant 1.000000e+00 : f32
    %62 = vector.broadcast %cst_32 : f32 to vector<2x16xf32>
    %63 = arith.addf %62, %61 : vector<2x16xf32>
    %64 = arith.divf %62, %63 : vector<2x16xf32>
    %65 = vector.extract_strided_slice %58 {offsets = [0, 16], sizes = [2, 16], strides = [1, 1]} : vector<2x64xf32> to vector<2x16xf32>
    %66 = arith.negf %65 : vector<2x16xf32>
    %67 = math.exp %66 : vector<2x16xf32>
    %cst_33 = arith.constant 1.000000e+00 : f32
    %68 = vector.broadcast %cst_33 : f32 to vector<2x16xf32>
    %69 = arith.addf %68, %67 : vector<2x16xf32>
    %70 = arith.divf %68, %69 : vector<2x16xf32>
    %71 = vector.extract_strided_slice %58 {offsets = [0, 32], sizes = [2, 16], strides = [1, 1]} : vector<2x64xf32> to vector<2x16xf32>
    %72 = math.tanh %71 : vector<2x16xf32>
    %73 = vector.extract_strided_slice %58 {offsets = [0, 48], sizes = [2, 16], strides = [1, 1]} : vector<2x64xf32> to vector<2x16xf32>
    %74 = arith.negf %73 : vector<2x16xf32>
    %75 = math.exp %74 : vector<2x16xf32>
    %cst_34 = arith.constant 1.000000e+00 : f32
    %76 = vector.broadcast %cst_34 : f32 to vector<2x16xf32>
    %77 = arith.addf %76, %75 : vector<2x16xf32>
    %78 = arith.divf %76, %77 : vector<2x16xf32>
    %79 = arith.mulf %70, %26 : vector<2x16xf32>
    %80 = arith.mulf %64, %72 : vector<2x16xf32>
    %81 = arith.addf %79, %80 : vector<2x16xf32>
    %82 = math.tanh %81 : vector<2x16xf32>
    %83 = arith.mulf %78, %82 : vector<2x16xf32>
    %84 = vector.extract_strided_slice %19 {offsets = [2, 0], sizes = [2, 64], strides = [1, 1]} : vector<16x64xf32> to vector<2x64xf32>
    %cst_35 = arith.constant dense<0.000000e+00> : vector<2x64xf32>
    %85 = tpu.matmul %54, %20, %cst_35 {dimension_numbers = #tpu.dot_dimension_numbers<[1], [0], [0], [1], [0, 0, 1, 1], [], []>} : vector<2x16xf32>, vector<16x64xf32>, vector<2x64xf32> -> vector<2x64xf32>
    %86 = arith.addf %84, %85 : vector<2x64xf32>
    %87 = vector.extract_strided_slice %86 {offsets = [0, 0], sizes = [2, 16], strides = [1, 1]} : vector<2x64xf32> to vector<2x16xf32>
    %88 = arith.negf %87 : vector<2x16xf32>
    %89 = math.exp %88 : vector<2x16xf32>
    %cst_36 = arith.constant 1.000000e+00 : f32
    %90 = vector.broadcast %cst_36 : f32 to vector<2x16xf32>
    %91 = arith.addf %90, %89 : vector<2x16xf32>
    %92 = arith.divf %90, %91 : vector<2x16xf32>
    %93 = vector.extract_strided_slice %86 {offsets = [0, 16], sizes = [2, 16], strides = [1, 1]} : vector<2x64xf32> to vector<2x16xf32>
    %94 = arith.negf %93 : vector<2x16xf32>
    %95 = math.exp %94 : vector<2x16xf32>
    %cst_37 = arith.constant 1.000000e+00 : f32
    %96 = vector.broadcast %cst_37 : f32 to vector<2x16xf32>
    %97 = arith.addf %96, %95 : vector<2x16xf32>
    %98 = arith.divf %96, %97 : vector<2x16xf32>
    %99 = vector.extract_strided_slice %86 {offsets = [0, 32], sizes = [2, 16], strides = [1, 1]} : vector<2x64xf32> to vector<2x16xf32>
    %100 = math.tanh %99 : vector<2x16xf32>
    %101 = vector.extract_strided_slice %86 {offsets = [0, 48], sizes = [2, 16], strides = [1, 1]} : vector<2x64xf32> to vector<2x16xf32>
    %102 = arith.negf %101 : vector<2x16xf32>
    %103 = math.exp %102 : vector<2x16xf32>
    %cst_38 = arith.constant 1.000000e+00 : f32
    %104 = vector.broadcast %cst_38 : f32 to vector<2x16xf32>
    %105 = arith.addf %104, %103 : vector<2x16xf32>
    %106 = arith.divf %104, %105 : vector<2x16xf32>
    %107 = arith.mulf %98, %52 : vector<2x16xf32>
    %108 = arith.mulf %92, %100 : vector<2x16xf32>
    %109 = arith.addf %107, %108 : vector<2x16xf32>
    %110 = math.tanh %109 : vector<2x16xf32>
    %111 = arith.mulf %106, %110 : vector<2x16xf32>
    %cst_39 = arith.constant dense<0.000000e+00> : vector<2x64xf32>
    %112 = tpu.matmul %111, %21, %cst_39 {dimension_numbers = #tpu.dot_dimension_numbers<[1], [0], [0], [1], [0, 0, 1, 1], [], []>} : vector<2x16xf32>, vector<16x64xf32>, vector<2x64xf32> -> vector<2x64xf32>
    %cst_40 = arith.constant dense<0.000000e+00> : vector<2x64xf32>
    %113 = tpu.matmul %83, %22, %cst_40 {dimension_numbers = #tpu.dot_dimension_numbers<[1], [0], [0], [1], [0, 0, 1, 1], [], []>} : vector<2x16xf32>, vector<16x64xf32>, vector<2x64xf32> -> vector<2x64xf32>
    %114 = arith.addf %112, %113 : vector<2x64xf32>
    %115 = arith.addf %114, %25 : vector<2x64xf32>
    %116 = vector.extract_strided_slice %115 {offsets = [0, 0], sizes = [2, 16], strides = [1, 1]} : vector<2x64xf32> to vector<2x16xf32>
    %117 = arith.negf %116 : vector<2x16xf32>
    %118 = math.exp %117 : vector<2x16xf32>
    %cst_41 = arith.constant 1.000000e+00 : f32
    %119 = vector.broadcast %cst_41 : f32 to vector<2x16xf32>
    %120 = arith.addf %119, %118 : vector<2x16xf32>
    %121 = arith.divf %119, %120 : vector<2x16xf32>
    %122 = vector.extract_strided_slice %115 {offsets = [0, 16], sizes = [2, 16], strides = [1, 1]} : vector<2x64xf32> to vector<2x16xf32>
    %123 = arith.negf %122 : vector<2x16xf32>
    %124 = math.exp %123 : vector<2x16xf32>
    %cst_42 = arith.constant 1.000000e+00 : f32
    %125 = vector.broadcast %cst_42 : f32 to vector<2x16xf32>
    %126 = arith.addf %125, %124 : vector<2x16xf32>
    %127 = arith.divf %125, %126 : vector<2x16xf32>
    %128 = vector.extract_strided_slice %115 {offsets = [0, 32], sizes = [2, 16], strides = [1, 1]} : vector<2x64xf32> to vector<2x16xf32>
    %129 = math.tanh %128 : vector<2x16xf32>
    %130 = vector.extract_strided_slice %115 {offsets = [0, 48], sizes = [2, 16], strides = [1, 1]} : vector<2x64xf32> to vector<2x16xf32>
    %131 = arith.negf %130 : vector<2x16xf32>
    %132 = math.exp %131 : vector<2x16xf32>
    %cst_43 = arith.constant 1.000000e+00 : f32
    %133 = vector.broadcast %cst_43 : f32 to vector<2x16xf32>
    %134 = arith.addf %133, %132 : vector<2x16xf32>
    %135 = arith.divf %133, %134 : vector<2x16xf32>
    %136 = arith.mulf %127, %81 : vector<2x16xf32>
    %137 = arith.mulf %121, %129 : vector<2x16xf32>
    %138 = arith.addf %136, %137 : vector<2x16xf32>
    %139 = math.tanh %138 : vector<2x16xf32>
    %140 = arith.mulf %135, %139 : vector<2x16xf32>
    %141 = vector.extract_strided_slice %19 {offsets = [4, 0], sizes = [2, 64], strides = [1, 1]} : vector<16x64xf32> to vector<2x64xf32>
    %cst_44 = arith.constant dense<0.000000e+00> : vector<2x64xf32>
    %142 = tpu.matmul %111, %20, %cst_44 {dimension_numbers = #tpu.dot_dimension_numbers<[1], [0], [0], [1], [0, 0, 1, 1], [], []>} : vector<2x16xf32>, vector<16x64xf32>, vector<2x64xf32> -> vector<2x64xf32>
    %143 = arith.addf %141, %142 : vector<2x64xf32>
    %144 = vector.extract_strided_slice %143 {offsets = [0, 0], sizes = [2, 16], strides = [1, 1]} : vector<2x64xf32> to vector<2x16xf32>
    %145 = arith.negf %144 : vector<2x16xf32>
    %146 = math.exp %145 : vector<2x16xf32>
    %cst_45 = arith.constant 1.000000e+00 : f32
    %147 = vector.broadcast %cst_45 : f32 to vector<2x16xf32>
    %148 = arith.addf %147, %146 : vector<2x16xf32>
    %149 = arith.divf %147, %148 : vector<2x16xf32>
    %150 = vector.extract_strided_slice %143 {offsets = [0, 16], sizes = [2, 16], strides = [1, 1]} : vector<2x64xf32> to vector<2x16xf32>
    %151 = arith.negf %150 : vector<2x16xf32>
    %152 = math.exp %151 : vector<2x16xf32>
    %cst_46 = arith.constant 1.000000e+00 : f32
    %153 = vector.broadcast %cst_46 : f32 to vector<2x16xf32>
    %154 = arith.addf %153, %152 : vector<2x16xf32>
    %155 = arith.divf %153, %154 : vector<2x16xf32>
    %156 = vector.extract_strided_slice %143 {offsets = [0, 32], sizes = [2, 16], strides = [1, 1]} : vector<2x64xf32> to vector<2x16xf32>
    %157 = math.tanh %156 : vector<2x16xf32>
    %158 = vector.extract_strided_slice %143 {offsets = [0, 48], sizes = [2, 16], strides = [1, 1]} : vector<2x64xf32> to vector<2x16xf32>
    %159 = arith.negf %158 : vector<2x16xf32>
    %160 = math.exp %159 : vector<2x16xf32>
    %cst_47 = arith.constant 1.000000e+00 : f32
    %161 = vector.broadcast %cst_47 : f32 to vector<2x16xf32>
    %162 = arith.addf %161, %160 : vector<2x16xf32>
    %163 = arith.divf %161, %162 : vector<2x16xf32>
    %164 = arith.mulf %155, %109 : vector<2x16xf32>
    %165 = arith.mulf %149, %157 : vector<2x16xf32>
    %166 = arith.addf %164, %165 : vector<2x16xf32>
    %167 = math.tanh %166 : vector<2x16xf32>
    %168 = arith.mulf %163, %167 : vector<2x16xf32>
    %cst_48 = arith.constant dense<0.000000e+00> : vector<2x64xf32>
    %169 = tpu.matmul %168, %21, %cst_48 {dimension_numbers = #tpu.dot_dimension_numbers<[1], [0], [0], [1], [0, 0, 1, 1], [], []>} : vector<2x16xf32>, vector<16x64xf32>, vector<2x64xf32> -> vector<2x64xf32>
    %cst_49 = arith.constant dense<0.000000e+00> : vector<2x64xf32>
    %170 = tpu.matmul %140, %22, %cst_49 {dimension_numbers = #tpu.dot_dimension_numbers<[1], [0], [0], [1], [0, 0, 1, 1], [], []>} : vector<2x16xf32>, vector<16x64xf32>, vector<2x64xf32> -> vector<2x64xf32>
    %171 = arith.addf %169, %170 : vector<2x64xf32>
    %172 = arith.addf %171, %25 : vector<2x64xf32>
    %173 = vector.extract_strided_slice %172 {offsets = [0, 0], sizes = [2, 16], strides = [1, 1]} : vector<2x64xf32> to vector<2x16xf32>
    %174 = arith.negf %173 : vector<2x16xf32>
    %175 = math.exp %174 : vector<2x16xf32>
    %cst_50 = arith.constant 1.000000e+00 : f32
    %176 = vector.broadcast %cst_50 : f32 to vector<2x16xf32>
    %177 = arith.addf %176, %175 : vector<2x16xf32>
    %178 = arith.divf %176, %177 : vector<2x16xf32>
    %179 = vector.extract_strided_slice %172 {offsets = [0, 16], sizes = [2, 16], strides = [1, 1]} : vector<2x64xf32> to vector<2x16xf32>
    %180 = arith.negf %179 : vector<2x16xf32>
    %181 = math.exp %180 : vector<2x16xf32>
    %cst_51 = arith.constant 1.000000e+00 : f32
    %182 = vector.broadcast %cst_51 : f32 to vector<2x16xf32>
    %183 = arith.addf %182, %181 : vector<2x16xf32>
    %184 = arith.divf %182, %183 : vector<2x16xf32>
    %185 = vector.extract_strided_slice %172 {offsets = [0, 32], sizes = [2, 16], strides = [1, 1]} : vector<2x64xf32> to vector<2x16xf32>
    %186 = math.tanh %185 : vector<2x16xf32>
    %187 = vector.extract_strided_slice %172 {offsets = [0, 48], sizes = [2, 16], strides = [1, 1]} : vector<2x64xf32> to vector<2x16xf32>
    %188 = arith.negf %187 : vector<2x16xf32>
    %189 = math.exp %188 : vector<2x16xf32>
    %cst_52 = arith.constant 1.000000e+00 : f32
    %190 = vector.broadcast %cst_52 : f32 to vector<2x16xf32>
    %191 = arith.addf %190, %189 : vector<2x16xf32>
    %192 = arith.divf %190, %191 : vector<2x16xf32>
    %193 = arith.mulf %184, %138 : vector<2x16xf32>
    %194 = arith.mulf %178, %186 : vector<2x16xf32>
    %195 = arith.addf %193, %194 : vector<2x16xf32>
    %196 = math.tanh %195 : vector<2x16xf32>
    %197 = arith.mulf %192, %196 : vector<2x16xf32>
    %198 = vector.extract_strided_slice %19 {offsets = [6, 0], sizes = [2, 64], strides = [1, 1]} : vector<16x64xf32> to vector<2x64xf32>
    %cst_53 = arith.constant dense<0.000000e+00> : vector<2x64xf32>
    %199 = tpu.matmul %168, %20, %cst_53 {dimension_numbers = #tpu.dot_dimension_numbers<[1], [0], [0], [1], [0, 0, 1, 1], [], []>} : vector<2x16xf32>, vector<16x64xf32>, vector<2x64xf32> -> vector<2x64xf32>
    %200 = arith.addf %198, %199 : vector<2x64xf32>
    %201 = vector.extract_strided_slice %200 {offsets = [0, 0], sizes = [2, 16], strides = [1, 1]} : vector<2x64xf32> to vector<2x16xf32>
    %202 = arith.negf %201 : vector<2x16xf32>
    %203 = math.exp %202 : vector<2x16xf32>
    %cst_54 = arith.constant 1.000000e+00 : f32
    %204 = vector.broadcast %cst_54 : f32 to vector<2x16xf32>
    %205 = arith.addf %204, %203 : vector<2x16xf32>
    %206 = arith.divf %204, %205 : vector<2x16xf32>
    %207 = vector.extract_strided_slice %200 {offsets = [0, 16], sizes = [2, 16], strides = [1, 1]} : vector<2x64xf32> to vector<2x16xf32>
    %208 = arith.negf %207 : vector<2x16xf32>
    %209 = math.exp %208 : vector<2x16xf32>
    %cst_55 = arith.constant 1.000000e+00 : f32
    %210 = vector.broadcast %cst_55 : f32 to vector<2x16xf32>
    %211 = arith.addf %210, %209 : vector<2x16xf32>
    %212 = arith.divf %210, %211 : vector<2x16xf32>
    %213 = vector.extract_strided_slice %200 {offsets = [0, 32], sizes = [2, 16], strides = [1, 1]} : vector<2x64xf32> to vector<2x16xf32>
    %214 = math.tanh %213 : vector<2x16xf32>
    %215 = vector.extract_strided_slice %200 {offsets = [0, 48], sizes = [2, 16], strides = [1, 1]} : vector<2x64xf32> to vector<2x16xf32>
    %216 = arith.negf %215 : vector<2x16xf32>
    %217 = math.exp %216 : vector<2x16xf32>
    %cst_56 = arith.constant 1.000000e+00 : f32
    %218 = vector.broadcast %cst_56 : f32 to vector<2x16xf32>
    %219 = arith.addf %218, %217 : vector<2x16xf32>
    %220 = arith.divf %218, %219 : vector<2x16xf32>
    %221 = arith.mulf %212, %166 : vector<2x16xf32>
    %222 = arith.mulf %206, %214 : vector<2x16xf32>
    %223 = arith.addf %221, %222 : vector<2x16xf32>
    %224 = math.tanh %223 : vector<2x16xf32>
    %225 = arith.mulf %220, %224 : vector<2x16xf32>
    %cst_57 = arith.constant dense<0.000000e+00> : vector<2x64xf32>
    %226 = tpu.matmul %225, %21, %cst_57 {dimension_numbers = #tpu.dot_dimension_numbers<[1], [0], [0], [1], [0, 0, 1, 1], [], []>} : vector<2x16xf32>, vector<16x64xf32>, vector<2x64xf32> -> vector<2x64xf32>
    %cst_58 = arith.constant dense<0.000000e+00> : vector<2x64xf32>
    %227 = tpu.matmul %197, %22, %cst_58 {dimension_numbers = #tpu.dot_dimension_numbers<[1], [0], [0], [1], [0, 0, 1, 1], [], []>} : vector<2x16xf32>, vector<16x64xf32>, vector<2x64xf32> -> vector<2x64xf32>
    %228 = arith.addf %226, %227 : vector<2x64xf32>
    %229 = arith.addf %228, %25 : vector<2x64xf32>
    %230 = vector.extract_strided_slice %229 {offsets = [0, 0], sizes = [2, 16], strides = [1, 1]} : vector<2x64xf32> to vector<2x16xf32>
    %231 = arith.negf %230 : vector<2x16xf32>
    %232 = math.exp %231 : vector<2x16xf32>
    %cst_59 = arith.constant 1.000000e+00 : f32
    %233 = vector.broadcast %cst_59 : f32 to vector<2x16xf32>
    %234 = arith.addf %233, %232 : vector<2x16xf32>
    %235 = arith.divf %233, %234 : vector<2x16xf32>
    %236 = vector.extract_strided_slice %229 {offsets = [0, 16], sizes = [2, 16], strides = [1, 1]} : vector<2x64xf32> to vector<2x16xf32>
    %237 = arith.negf %236 : vector<2x16xf32>
    %238 = math.exp %237 : vector<2x16xf32>
    %cst_60 = arith.constant 1.000000e+00 : f32
    %239 = vector.broadcast %cst_60 : f32 to vector<2x16xf32>
    %240 = arith.addf %239, %238 : vector<2x16xf32>
    %241 = arith.divf %239, %240 : vector<2x16xf32>
    %242 = vector.extract_strided_slice %229 {offsets = [0, 32], sizes = [2, 16], strides = [1, 1]} : vector<2x64xf32> to vector<2x16xf32>
    %243 = math.tanh %242 : vector<2x16xf32>
    %244 = vector.extract_strided_slice %229 {offsets = [0, 48], sizes = [2, 16], strides = [1, 1]} : vector<2x64xf32> to vector<2x16xf32>
    %245 = arith.negf %244 : vector<2x16xf32>
    %246 = math.exp %245 : vector<2x16xf32>
    %cst_61 = arith.constant 1.000000e+00 : f32
    %247 = vector.broadcast %cst_61 : f32 to vector<2x16xf32>
    %248 = arith.addf %247, %246 : vector<2x16xf32>
    %249 = arith.divf %247, %248 : vector<2x16xf32>
    %250 = arith.mulf %241, %195 : vector<2x16xf32>
    %251 = arith.mulf %235, %243 : vector<2x16xf32>
    %252 = arith.addf %250, %251 : vector<2x16xf32>
    %253 = math.tanh %252 : vector<2x16xf32>
    %254 = arith.mulf %249, %253 : vector<2x16xf32>
    %255 = vector.extract_strided_slice %19 {offsets = [8, 0], sizes = [2, 64], strides = [1, 1]} : vector<16x64xf32> to vector<2x64xf32>
    %cst_62 = arith.constant dense<0.000000e+00> : vector<2x64xf32>
    %256 = tpu.matmul %225, %20, %cst_62 {dimension_numbers = #tpu.dot_dimension_numbers<[1], [0], [0], [1], [0, 0, 1, 1], [], []>} : vector<2x16xf32>, vector<16x64xf32>, vector<2x64xf32> -> vector<2x64xf32>
    %257 = arith.addf %255, %256 : vector<2x64xf32>
    %258 = vector.extract_strided_slice %257 {offsets = [0, 0], sizes = [2, 16], strides = [1, 1]} : vector<2x64xf32> to vector<2x16xf32>
    %259 = arith.negf %258 : vector<2x16xf32>
    %260 = math.exp %259 : vector<2x16xf32>
    %cst_63 = arith.constant 1.000000e+00 : f32
    %261 = vector.broadcast %cst_63 : f32 to vector<2x16xf32>
    %262 = arith.addf %261, %260 : vector<2x16xf32>
    %263 = arith.divf %261, %262 : vector<2x16xf32>
    %264 = vector.extract_strided_slice %257 {offsets = [0, 16], sizes = [2, 16], strides = [1, 1]} : vector<2x64xf32> to vector<2x16xf32>
    %265 = arith.negf %264 : vector<2x16xf32>
    %266 = math.exp %265 : vector<2x16xf32>
    %cst_64 = arith.constant 1.000000e+00 : f32
    %267 = vector.broadcast %cst_64 : f32 to vector<2x16xf32>
    %268 = arith.addf %267, %266 : vector<2x16xf32>
    %269 = arith.divf %267, %268 : vector<2x16xf32>
    %270 = vector.extract_strided_slice %257 {offsets = [0, 32], sizes = [2, 16], strides = [1, 1]} : vector<2x64xf32> to vector<2x16xf32>
    %271 = math.tanh %270 : vector<2x16xf32>
    %272 = vector.extract_strided_slice %257 {offsets = [0, 48], sizes = [2, 16], strides = [1, 1]} : vector<2x64xf32> to vector<2x16xf32>
    %273 = arith.negf %272 : vector<2x16xf32>
    %274 = math.exp %273 : vector<2x16xf32>
    %cst_65 = arith.constant 1.000000e+00 : f32
    %275 = vector.broadcast %cst_65 : f32 to vector<2x16xf32>
    %276 = arith.addf %275, %274 : vector<2x16xf32>
    %277 = arith.divf %275, %276 : vector<2x16xf32>
    %278 = arith.mulf %269, %223 : vector<2x16xf32>
    %279 = arith.mulf %263, %271 : vector<2x16xf32>
    %280 = arith.addf %278, %279 : vector<2x16xf32>
    %281 = math.tanh %280 : vector<2x16xf32>
    %282 = arith.mulf %277, %281 : vector<2x16xf32>
    %cst_66 = arith.constant dense<0.000000e+00> : vector<2x64xf32>
    %283 = tpu.matmul %282, %21, %cst_66 {dimension_numbers = #tpu.dot_dimension_numbers<[1], [0], [0], [1], [0, 0, 1, 1], [], []>} : vector<2x16xf32>, vector<16x64xf32>, vector<2x64xf32> -> vector<2x64xf32>
    %cst_67 = arith.constant dense<0.000000e+00> : vector<2x64xf32>
    %284 = tpu.matmul %254, %22, %cst_67 {dimension_numbers = #tpu.dot_dimension_numbers<[1], [0], [0], [1], [0, 0, 1, 1], [], []>} : vector<2x16xf32>, vector<16x64xf32>, vector<2x64xf32> -> vector<2x64xf32>
    %285 = arith.addf %283, %284 : vector<2x64xf32>
    %286 = arith.addf %285, %25 : vector<2x64xf32>
    %287 = vector.extract_strided_slice %286 {offsets = [0, 0], sizes = [2, 16], strides = [1, 1]} : vector<2x64xf32> to vector<2x16xf32>
    %288 = arith.negf %287 : vector<2x16xf32>
    %289 = math.exp %288 : vector<2x16xf32>
    %cst_68 = arith.constant 1.000000e+00 : f32
    %290 = vector.broadcast %cst_68 : f32 to vector<2x16xf32>
    %291 = arith.addf %290, %289 : vector<2x16xf32>
    %292 = arith.divf %290, %291 : vector<2x16xf32>
    %293 = vector.extract_strided_slice %286 {offsets = [0, 16], sizes = [2, 16], strides = [1, 1]} : vector<2x64xf32> to vector<2x16xf32>
    %294 = arith.negf %293 : vector<2x16xf32>
    %295 = math.exp %294 : vector<2x16xf32>
    %cst_69 = arith.constant 1.000000e+00 : f32
    %296 = vector.broadcast %cst_69 : f32 to vector<2x16xf32>
    %297 = arith.addf %296, %295 : vector<2x16xf32>
    %298 = arith.divf %296, %297 : vector<2x16xf32>
    %299 = vector.extract_strided_slice %286 {offsets = [0, 32], sizes = [2, 16], strides = [1, 1]} : vector<2x64xf32> to vector<2x16xf32>
    %300 = math.tanh %299 : vector<2x16xf32>
    %301 = vector.extract_strided_slice %286 {offsets = [0, 48], sizes = [2, 16], strides = [1, 1]} : vector<2x64xf32> to vector<2x16xf32>
    %302 = arith.negf %301 : vector<2x16xf32>
    %303 = math.exp %302 : vector<2x16xf32>
    %cst_70 = arith.constant 1.000000e+00 : f32
    %304 = vector.broadcast %cst_70 : f32 to vector<2x16xf32>
    %305 = arith.addf %304, %303 : vector<2x16xf32>
    %306 = arith.divf %304, %305 : vector<2x16xf32>
    %307 = arith.mulf %298, %252 : vector<2x16xf32>
    %308 = arith.mulf %292, %300 : vector<2x16xf32>
    %309 = arith.addf %307, %308 : vector<2x16xf32>
    %310 = math.tanh %309 : vector<2x16xf32>
    %311 = arith.mulf %306, %310 : vector<2x16xf32>
    %312 = vector.extract_strided_slice %19 {offsets = [10, 0], sizes = [2, 64], strides = [1, 1]} : vector<16x64xf32> to vector<2x64xf32>
    %cst_71 = arith.constant dense<0.000000e+00> : vector<2x64xf32>
    %313 = tpu.matmul %282, %20, %cst_71 {dimension_numbers = #tpu.dot_dimension_numbers<[1], [0], [0], [1], [0, 0, 1, 1], [], []>} : vector<2x16xf32>, vector<16x64xf32>, vector<2x64xf32> -> vector<2x64xf32>
    %314 = arith.addf %312, %313 : vector<2x64xf32>
    %315 = vector.extract_strided_slice %314 {offsets = [0, 0], sizes = [2, 16], strides = [1, 1]} : vector<2x64xf32> to vector<2x16xf32>
    %316 = arith.negf %315 : vector<2x16xf32>
    %317 = math.exp %316 : vector<2x16xf32>
    %cst_72 = arith.constant 1.000000e+00 : f32
    %318 = vector.broadcast %cst_72 : f32 to vector<2x16xf32>
    %319 = arith.addf %318, %317 : vector<2x16xf32>
    %320 = arith.divf %318, %319 : vector<2x16xf32>
    %321 = vector.extract_strided_slice %314 {offsets = [0, 16], sizes = [2, 16], strides = [1, 1]} : vector<2x64xf32> to vector<2x16xf32>
    %322 = arith.negf %321 : vector<2x16xf32>
    %323 = math.exp %322 : vector<2x16xf32>
    %cst_73 = arith.constant 1.000000e+00 : f32
    %324 = vector.broadcast %cst_73 : f32 to vector<2x16xf32>
    %325 = arith.addf %324, %323 : vector<2x16xf32>
    %326 = arith.divf %324, %325 : vector<2x16xf32>
    %327 = vector.extract_strided_slice %314 {offsets = [0, 32], sizes = [2, 16], strides = [1, 1]} : vector<2x64xf32> to vector<2x16xf32>
    %328 = math.tanh %327 : vector<2x16xf32>
    %329 = vector.extract_strided_slice %314 {offsets = [0, 48], sizes = [2, 16], strides = [1, 1]} : vector<2x64xf32> to vector<2x16xf32>
    %330 = arith.negf %329 : vector<2x16xf32>
    %331 = math.exp %330 : vector<2x16xf32>
    %cst_74 = arith.constant 1.000000e+00 : f32
    %332 = vector.broadcast %cst_74 : f32 to vector<2x16xf32>
    %333 = arith.addf %332, %331 : vector<2x16xf32>
    %334 = arith.divf %332, %333 : vector<2x16xf32>
    %335 = arith.mulf %326, %280 : vector<2x16xf32>
    %336 = arith.mulf %320, %328 : vector<2x16xf32>
    %337 = arith.addf %335, %336 : vector<2x16xf32>
    %338 = math.tanh %337 : vector<2x16xf32>
    %339 = arith.mulf %334, %338 : vector<2x16xf32>
    %cst_75 = arith.constant dense<0.000000e+00> : vector<2x64xf32>
    %340 = tpu.matmul %339, %21, %cst_75 {dimension_numbers = #tpu.dot_dimension_numbers<[1], [0], [0], [1], [0, 0, 1, 1], [], []>} : vector<2x16xf32>, vector<16x64xf32>, vector<2x64xf32> -> vector<2x64xf32>
    %cst_76 = arith.constant dense<0.000000e+00> : vector<2x64xf32>
    %341 = tpu.matmul %311, %22, %cst_76 {dimension_numbers = #tpu.dot_dimension_numbers<[1], [0], [0], [1], [0, 0, 1, 1], [], []>} : vector<2x16xf32>, vector<16x64xf32>, vector<2x64xf32> -> vector<2x64xf32>
    %342 = arith.addf %340, %341 : vector<2x64xf32>
    %343 = arith.addf %342, %25 : vector<2x64xf32>
    %344 = vector.extract_strided_slice %343 {offsets = [0, 0], sizes = [2, 16], strides = [1, 1]} : vector<2x64xf32> to vector<2x16xf32>
    %345 = arith.negf %344 : vector<2x16xf32>
    %346 = math.exp %345 : vector<2x16xf32>
    %cst_77 = arith.constant 1.000000e+00 : f32
    %347 = vector.broadcast %cst_77 : f32 to vector<2x16xf32>
    %348 = arith.addf %347, %346 : vector<2x16xf32>
    %349 = arith.divf %347, %348 : vector<2x16xf32>
    %350 = vector.extract_strided_slice %343 {offsets = [0, 16], sizes = [2, 16], strides = [1, 1]} : vector<2x64xf32> to vector<2x16xf32>
    %351 = arith.negf %350 : vector<2x16xf32>
    %352 = math.exp %351 : vector<2x16xf32>
    %cst_78 = arith.constant 1.000000e+00 : f32
    %353 = vector.broadcast %cst_78 : f32 to vector<2x16xf32>
    %354 = arith.addf %353, %352 : vector<2x16xf32>
    %355 = arith.divf %353, %354 : vector<2x16xf32>
    %356 = vector.extract_strided_slice %343 {offsets = [0, 32], sizes = [2, 16], strides = [1, 1]} : vector<2x64xf32> to vector<2x16xf32>
    %357 = math.tanh %356 : vector<2x16xf32>
    %358 = vector.extract_strided_slice %343 {offsets = [0, 48], sizes = [2, 16], strides = [1, 1]} : vector<2x64xf32> to vector<2x16xf32>
    %359 = arith.negf %358 : vector<2x16xf32>
    %360 = math.exp %359 : vector<2x16xf32>
    %cst_79 = arith.constant 1.000000e+00 : f32
    %361 = vector.broadcast %cst_79 : f32 to vector<2x16xf32>
    %362 = arith.addf %361, %360 : vector<2x16xf32>
    %363 = arith.divf %361, %362 : vector<2x16xf32>
    %364 = arith.mulf %355, %309 : vector<2x16xf32>
    %365 = arith.mulf %349, %357 : vector<2x16xf32>
    %366 = arith.addf %364, %365 : vector<2x16xf32>
    %367 = math.tanh %366 : vector<2x16xf32>
    %368 = arith.mulf %363, %367 : vector<2x16xf32>
    %369 = vector.extract_strided_slice %19 {offsets = [12, 0], sizes = [2, 64], strides = [1, 1]} : vector<16x64xf32> to vector<2x64xf32>
    %cst_80 = arith.constant dense<0.000000e+00> : vector<2x64xf32>
    %370 = tpu.matmul %339, %20, %cst_80 {dimension_numbers = #tpu.dot_dimension_numbers<[1], [0], [0], [1], [0, 0, 1, 1], [], []>} : vector<2x16xf32>, vector<16x64xf32>, vector<2x64xf32> -> vector<2x64xf32>
    %371 = arith.addf %369, %370 : vector<2x64xf32>
    %372 = vector.extract_strided_slice %371 {offsets = [0, 0], sizes = [2, 16], strides = [1, 1]} : vector<2x64xf32> to vector<2x16xf32>
    %373 = arith.negf %372 : vector<2x16xf32>
    %374 = math.exp %373 : vector<2x16xf32>
    %cst_81 = arith.constant 1.000000e+00 : f32
    %375 = vector.broadcast %cst_81 : f32 to vector<2x16xf32>
    %376 = arith.addf %375, %374 : vector<2x16xf32>
    %377 = arith.divf %375, %376 : vector<2x16xf32>
    %378 = vector.extract_strided_slice %371 {offsets = [0, 16], sizes = [2, 16], strides = [1, 1]} : vector<2x64xf32> to vector<2x16xf32>
    %379 = arith.negf %378 : vector<2x16xf32>
    %380 = math.exp %379 : vector<2x16xf32>
    %cst_82 = arith.constant 1.000000e+00 : f32
    %381 = vector.broadcast %cst_82 : f32 to vector<2x16xf32>
    %382 = arith.addf %381, %380 : vector<2x16xf32>
    %383 = arith.divf %381, %382 : vector<2x16xf32>
    %384 = vector.extract_strided_slice %371 {offsets = [0, 32], sizes = [2, 16], strides = [1, 1]} : vector<2x64xf32> to vector<2x16xf32>
    %385 = math.tanh %384 : vector<2x16xf32>
    %386 = vector.extract_strided_slice %371 {offsets = [0, 48], sizes = [2, 16], strides = [1, 1]} : vector<2x64xf32> to vector<2x16xf32>
    %387 = arith.negf %386 : vector<2x16xf32>
    %388 = math.exp %387 : vector<2x16xf32>
    %cst_83 = arith.constant 1.000000e+00 : f32
    %389 = vector.broadcast %cst_83 : f32 to vector<2x16xf32>
    %390 = arith.addf %389, %388 : vector<2x16xf32>
    %391 = arith.divf %389, %390 : vector<2x16xf32>
    %392 = arith.mulf %383, %337 : vector<2x16xf32>
    %393 = arith.mulf %377, %385 : vector<2x16xf32>
    %394 = arith.addf %392, %393 : vector<2x16xf32>
    %395 = math.tanh %394 : vector<2x16xf32>
    %396 = arith.mulf %391, %395 : vector<2x16xf32>
    %cst_84 = arith.constant dense<0.000000e+00> : vector<2x64xf32>
    %397 = tpu.matmul %396, %21, %cst_84 {dimension_numbers = #tpu.dot_dimension_numbers<[1], [0], [0], [1], [0, 0, 1, 1], [], []>} : vector<2x16xf32>, vector<16x64xf32>, vector<2x64xf32> -> vector<2x64xf32>
    %cst_85 = arith.constant dense<0.000000e+00> : vector<2x64xf32>
    %398 = tpu.matmul %368, %22, %cst_85 {dimension_numbers = #tpu.dot_dimension_numbers<[1], [0], [0], [1], [0, 0, 1, 1], [], []>} : vector<2x16xf32>, vector<16x64xf32>, vector<2x64xf32> -> vector<2x64xf32>
    %399 = arith.addf %397, %398 : vector<2x64xf32>
    %400 = arith.addf %399, %25 : vector<2x64xf32>
    %401 = vector.extract_strided_slice %400 {offsets = [0, 0], sizes = [2, 16], strides = [1, 1]} : vector<2x64xf32> to vector<2x16xf32>
    %402 = arith.negf %401 : vector<2x16xf32>
    %403 = math.exp %402 : vector<2x16xf32>
    %cst_86 = arith.constant 1.000000e+00 : f32
    %404 = vector.broadcast %cst_86 : f32 to vector<2x16xf32>
    %405 = arith.addf %404, %403 : vector<2x16xf32>
    %406 = arith.divf %404, %405 : vector<2x16xf32>
    %407 = vector.extract_strided_slice %400 {offsets = [0, 16], sizes = [2, 16], strides = [1, 1]} : vector<2x64xf32> to vector<2x16xf32>
    %408 = arith.negf %407 : vector<2x16xf32>
    %409 = math.exp %408 : vector<2x16xf32>
    %cst_87 = arith.constant 1.000000e+00 : f32
    %410 = vector.broadcast %cst_87 : f32 to vector<2x16xf32>
    %411 = arith.addf %410, %409 : vector<2x16xf32>
    %412 = arith.divf %410, %411 : vector<2x16xf32>
    %413 = vector.extract_strided_slice %400 {offsets = [0, 32], sizes = [2, 16], strides = [1, 1]} : vector<2x64xf32> to vector<2x16xf32>
    %414 = math.tanh %413 : vector<2x16xf32>
    %415 = vector.extract_strided_slice %400 {offsets = [0, 48], sizes = [2, 16], strides = [1, 1]} : vector<2x64xf32> to vector<2x16xf32>
    %416 = arith.negf %415 : vector<2x16xf32>
    %417 = math.exp %416 : vector<2x16xf32>
    %cst_88 = arith.constant 1.000000e+00 : f32
    %418 = vector.broadcast %cst_88 : f32 to vector<2x16xf32>
    %419 = arith.addf %418, %417 : vector<2x16xf32>
    %420 = arith.divf %418, %419 : vector<2x16xf32>
    %421 = arith.mulf %412, %366 : vector<2x16xf32>
    %422 = arith.mulf %406, %414 : vector<2x16xf32>
    %423 = arith.addf %421, %422 : vector<2x16xf32>
    %424 = math.tanh %423 : vector<2x16xf32>
    %425 = arith.mulf %420, %424 : vector<2x16xf32>
    %426 = vector.extract_strided_slice %19 {offsets = [14, 0], sizes = [2, 64], strides = [1, 1]} : vector<16x64xf32> to vector<2x64xf32>
    %cst_89 = arith.constant dense<0.000000e+00> : vector<2x64xf32>
    %427 = tpu.matmul %396, %20, %cst_89 {dimension_numbers = #tpu.dot_dimension_numbers<[1], [0], [0], [1], [0, 0, 1, 1], [], []>} : vector<2x16xf32>, vector<16x64xf32>, vector<2x64xf32> -> vector<2x64xf32>
    %428 = arith.addf %426, %427 : vector<2x64xf32>
    %429 = vector.extract_strided_slice %428 {offsets = [0, 0], sizes = [2, 16], strides = [1, 1]} : vector<2x64xf32> to vector<2x16xf32>
    %430 = arith.negf %429 : vector<2x16xf32>
    %431 = math.exp %430 : vector<2x16xf32>
    %cst_90 = arith.constant 1.000000e+00 : f32
    %432 = vector.broadcast %cst_90 : f32 to vector<2x16xf32>
    %433 = arith.addf %432, %431 : vector<2x16xf32>
    %434 = arith.divf %432, %433 : vector<2x16xf32>
    %435 = vector.extract_strided_slice %428 {offsets = [0, 16], sizes = [2, 16], strides = [1, 1]} : vector<2x64xf32> to vector<2x16xf32>
    %436 = arith.negf %435 : vector<2x16xf32>
    %437 = math.exp %436 : vector<2x16xf32>
    %cst_91 = arith.constant 1.000000e+00 : f32
    %438 = vector.broadcast %cst_91 : f32 to vector<2x16xf32>
    %439 = arith.addf %438, %437 : vector<2x16xf32>
    %440 = arith.divf %438, %439 : vector<2x16xf32>
    %441 = vector.extract_strided_slice %428 {offsets = [0, 32], sizes = [2, 16], strides = [1, 1]} : vector<2x64xf32> to vector<2x16xf32>
    %442 = math.tanh %441 : vector<2x16xf32>
    %443 = vector.extract_strided_slice %428 {offsets = [0, 48], sizes = [2, 16], strides = [1, 1]} : vector<2x64xf32> to vector<2x16xf32>
    %444 = arith.negf %443 : vector<2x16xf32>
    %445 = math.exp %444 : vector<2x16xf32>
    %cst_92 = arith.constant 1.000000e+00 : f32
    %446 = vector.broadcast %cst_92 : f32 to vector<2x16xf32>
    %447 = arith.addf %446, %445 : vector<2x16xf32>
    %448 = arith.divf %446, %447 : vector<2x16xf32>
    %449 = arith.mulf %440, %394 : vector<2x16xf32>
    %450 = arith.mulf %434, %442 : vector<2x16xf32>
    %451 = arith.addf %449, %450 : vector<2x16xf32>
    %452 = math.tanh %451 : vector<2x16xf32>
    %453 = arith.mulf %448, %452 : vector<2x16xf32>
    %cst_93 = arith.constant dense<0.000000e+00> : vector<2x64xf32>
    %454 = tpu.matmul %453, %21, %cst_93 {dimension_numbers = #tpu.dot_dimension_numbers<[1], [0], [0], [1], [0, 0, 1, 1], [], []>} : vector<2x16xf32>, vector<16x64xf32>, vector<2x64xf32> -> vector<2x64xf32>
    %cst_94 = arith.constant dense<0.000000e+00> : vector<2x64xf32>
    %455 = tpu.matmul %425, %22, %cst_94 {dimension_numbers = #tpu.dot_dimension_numbers<[1], [0], [0], [1], [0, 0, 1, 1], [], []>} : vector<2x16xf32>, vector<16x64xf32>, vector<2x64xf32> -> vector<2x64xf32>
    %456 = arith.addf %454, %455 : vector<2x64xf32>
    %457 = arith.addf %456, %25 : vector<2x64xf32>
    %458 = vector.extract_strided_slice %457 {offsets = [0, 0], sizes = [2, 16], strides = [1, 1]} : vector<2x64xf32> to vector<2x16xf32>
    %459 = arith.negf %458 : vector<2x16xf32>
    %460 = math.exp %459 : vector<2x16xf32>
    %cst_95 = arith.constant 1.000000e+00 : f32
    %461 = vector.broadcast %cst_95 : f32 to vector<2x16xf32>
    %462 = arith.addf %461, %460 : vector<2x16xf32>
    %463 = arith.divf %461, %462 : vector<2x16xf32>
    %464 = vector.extract_strided_slice %457 {offsets = [0, 16], sizes = [2, 16], strides = [1, 1]} : vector<2x64xf32> to vector<2x16xf32>
    %465 = arith.negf %464 : vector<2x16xf32>
    %466 = math.exp %465 : vector<2x16xf32>
    %cst_96 = arith.constant 1.000000e+00 : f32
    %467 = vector.broadcast %cst_96 : f32 to vector<2x16xf32>
    %468 = arith.addf %467, %466 : vector<2x16xf32>
    %469 = arith.divf %467, %468 : vector<2x16xf32>
    %470 = vector.extract_strided_slice %457 {offsets = [0, 32], sizes = [2, 16], strides = [1, 1]} : vector<2x64xf32> to vector<2x16xf32>
    %471 = math.tanh %470 : vector<2x16xf32>
    %472 = vector.extract_strided_slice %457 {offsets = [0, 48], sizes = [2, 16], strides = [1, 1]} : vector<2x64xf32> to vector<2x16xf32>
    %473 = arith.negf %472 : vector<2x16xf32>
    %474 = math.exp %473 : vector<2x16xf32>
    %cst_97 = arith.constant 1.000000e+00 : f32
    %475 = vector.broadcast %cst_97 : f32 to vector<2x16xf32>
    %476 = arith.addf %475, %474 : vector<2x16xf32>
    %477 = arith.divf %475, %476 : vector<2x16xf32>
    %478 = arith.mulf %469, %423 : vector<2x16xf32>
    %479 = arith.mulf %463, %471 : vector<2x16xf32>
    %480 = arith.addf %478, %479 : vector<2x16xf32>
    %481 = math.tanh %480 : vector<2x16xf32>
    %482 = arith.mulf %477, %481 : vector<2x16xf32>
    %c0_98 = arith.constant 0 : index
    %c0_99 = arith.constant 0 : index
    %483 = vector.load %arg11[%c0_98, %c0_99] : memref<16x16xf32, #tpu.memory_space<vmem>>, vector<16x16xf32>
    %cst_100 = arith.constant dense<0.000000e+00> : vector<2x16xf32>
    %484 = tpu.matmul %482, %483, %cst_100 {dimension_numbers = #tpu.dot_dimension_numbers<[1], [0], [0], [1], [0, 0, 1, 1], [], []>} : vector<2x16xf32>, vector<16x16xf32>, vector<2x16xf32> -> vector<2x16xf32>
    %c0_101 = arith.constant 0 : index
    %c0_102 = arith.constant 0 : index
    %485 = vector.load %arg12[%c0_101, %c0_102] : memref<1x16xf32, #tpu.memory_space<vmem>>, vector<1x16xf32>
    %486 = vector.broadcast %485 : vector<1x16xf32> to vector<2x16xf32>
    %487 = arith.addf %484, %486 : vector<2x16xf32>
    %cst_103 = arith.constant 0.000000e+00 : f32
    %488 = vector.broadcast %cst_103 : f32 to vector<2x16xf32>
    %489 = arith.maximumf %487, %488 : vector<2x16xf32>
    %c0_104 = arith.constant 0 : index
    %c0_105 = arith.constant 0 : index
    %490 = vector.load %arg13[%c0_104, %c0_105] : memref<2x16xf32, #tpu.memory_space<vmem>>, vector<2x16xf32>
    tpu.vector_store %arg13[%c0_104, %c0_105], %489 {strides = array<i32>} : memref<2x16xf32, #tpu.memory_space<vmem>>, vector<2x16xf32>,
    return
  }
}

</mosaic_0001>

<bundles_post_ra>
// kernel: spatial_block_forward.1
= control target key start
LH: loop header
LB: loop body
LE: loop exit
PB: predicated region body
PF: predicated region fallthrough
CT: control target
= control target key end

     0   :  { %vm56_vm0 = vcmask 130048   ;;  %s3604_s0 = inlined_call_operand.vmem [shape: f32[16,16], index: 0, kind: input, shape index: {}]   ;;  %s3605_s1 = inlined_call_operand.vmem [shape: f32[16,16], index: 1, kind: input, shape index: {}]   ;;  %s3606_s2 = inlined_call_operand.vmem [shape: f32[1,16], index: 2, kind: input, shape index: {}]   ;;  %s3607_s3 = inlined_call_operand.vmem [shape: f32[16,16], index: 3, kind: input, shape index: {}]   ;;  %s3608_s4 = inlined_call_operand.vmem [shape: f32[1,16], index: 4, kind: input, shape index: {}]   ;;  %s3609_s5 = inlined_call_operand.vmem [shape: f32[16,64], index: 5, kind: input, shape index: {}]   ;;  %s3610_s6 = inlined_call_operand.vmem [shape: f32[16,64], index: 6, kind: input, shape index: {}]   ;;  %s3611_s7 = inlined_call_operand.vmem [shape: f32[1,64], index: 7, kind: input, shape index: {}]   ;;  %s3612_s8 = inlined_call_operand.vmem [shape: f32[16,64], index: 8, kind: input, shape index: {}]   ;;  %s3613_s9 = inlined_call_operand.vmem [shape: f32[16,64], index: 9, kind: input, shape index: {}]   ;;  %s3614_s10 = inlined_call_operand.vmem [shape: f32[1,64], index: 10, kind: input, shape index: {}]   ;;  %s3615_s11 = inlined_call_operand.vmem [shape: f32[16,16], index: 11, kind: input, shape index: {}]   ;;  %s3616_s12 = inlined_call_operand.vmem [shape: f32[1,16], index: 12, kind: input, shape index: {}]   ;;  %s3617_s13 = inlined_call_operand.hbm [shape: f32[2,16], index: 13, kind: output, shape index: {}]  }
   0x1   :  { %v48_v0 = vld [vmem:[%s3605_s1 + $0x8] sm:$0xff]  ;;  %v47_v1 = vld [vmem:[%s3605_s1] sm:$0xff] }
   0x2   :  { %v45_v2 = vld [vmem:[%s3604_s0] sm:$0xff]  ;;  %2776 = vmatprep.subr.mxu0 %v48_v0 }
   0x3   :  { %2780 = vmatprep.mubr.msk.f32.mxu0 %vm56_vm0, %v45_v2 }
   0x4   :  { %18 = vsyncpa [#allocation3], 0  ;;  %2777 = vmatpush3.msra.mxu0 %v48_v0  ;;  %v46_v3 = vld [vmem:[%s3604_s0 + $0x8] sm:$0xff]  ;;  %v140_v5 = vld [vmem:[%s3607_s3] sm:$0xff]  ;;  %v3130_v15 = vmov 0.0   ;;  %vm3131_vm1 = vmmov 0  }
   0x5   :  { %2778 = vmatprep.subr.mxu0 %v47_v1  ;;  %v141_v4 = vld [vmem:[%s3607_s3 + $0x8] sm:$0xff]  ;;  %v2639_v6 = vld [vmem:[%s3606_s2] ss:$0 sm:$0xff]  ;;  %vm2623_vm2 = vcmask 123904  }
   0x6   :  { %2779 = vmatpush3.msra.mxu0 %v47_v1  ;;  %2783 = vmatprep.subr.mxu1 %v141_v4  ;;  %v233_v13 = vld [vmem:[%s3609_s5 + $0x8] sm:$0xff]  ;;  %v232_v14 = vld [vmem:[%s3609_s5] sm:$0xff] }
   0x7   :  { %2781 = vmatmul.mubr.msk.f32.vlgmr.msra.gmra.mxu0 %vm56_vm0, %v46_v3  ;;  %2784 = vmatpush3.msra.mxu1 %v141_v4  ;;  %v3242_v16 = vld [vmem:[%s3610_s6 + $0x8] sm:$0xff]  ;;  %v3249_v17 = vld [vmem:[%s3610_s6] sm:$0xff] }
   0x8   :  { %2785 = vmatprep.subr.mxu1 %v140_v5  ;;  %2790 = vmatprep.subr.mxu0 %v233_v13  ;;  %v2642_v18 = vld [vmem:[%s3608_s4] ss:$0 sm:$0xff]  ;;  %s3132_s4 = smov 96   ;;  %v3282_v43 = vld [vmem:[%s3613_s9 + $0x8] sm:$0xff] }
   0x9   :  { %2786 = vmatpush3.msra.mxu1 %v140_v5  ;;  %2791 = vmatpush3.msra.mxu0 %v233_v13  ;;  %v2645_v27 = vld [vmem:[%s3611_s7] ss:$0 sm:$0xff]  ;;  %s3133_s7 = smov 16   ;;  %v3292_v45 = vld [vmem:[%s3612_s8 + $0x8] sm:$0xff] }
   0xa   :  { %2792 = vmatprep.subr.mxu0 %v232_v14  ;;  %2797 = vmatprep.subr.mxu1 %v3130_v15  ;;  %v3287_v44 = vld [vmem:[%s3613_s9] sm:$0xff]  ;;  %s3135_s9 = smov 80  }
   0xb   :  { %2793 = vmatpush3.msra.mxu0 %v232_v14  ;;  %v3299_v46 = vld [vmem:[%s3612_s8] sm:$0xff]  ;;  %s3134_s8 = smov 32  }
   0xc   :  { %2804 = vmatprep.subr.mxu0 %v3130_v15  ;;  %v3333_v53 = vld [vmem:[%s3614_s10] ss:$0 sm:$0xff] }
  0xc7   :  { %v2782_v7 = vpop.f32.mrf.mxu0 }
  0xc8   :  { %v135_v8 = vadd.f32 %v2782_v7, %v2639_v6 }
  0xc9   :  { %v129_v9 = vpop.f32.mrf.mxu0 }
  0xca   :  { %v130_v10 = vadd.f32 %v2639_v6, %v129_v9  ;;  %v139_v12 = vmax.f32 %v135_v8, 0.0 }
  0xcc   :  { %v138_v11 = vmax.f32 %v130_v10, 0.0 }
  0xce   :  { %2787 = vmatprep.mubr.msk.f32.mxu1 %vm56_vm0, %v138_v11 }
  0xcf   :  { %2788 = vmatmul.mubr.msk.f32.vlgmr.msra.gmra.mxu1 %vm56_vm0, %v139_v12 }
  0xd0   :  { %2798 = vmatpush3.msra.mxu1 %v3242_v16  ;;  %2801 = vmatprep.mubr.msk.f32.mxu1 %vm3131_vm1, %v3130_v15 }
  0xd1   :  { %2799 = vmatprep.subr.mxu1 %v3130_v15 }
  0xd2   :  { %2800 = vmatpush3.msra.mxu1 %v3249_v17 }
  0xd3   :  { %2802 = vmatmul.mubr.f32.vlgmr.msra.gmra.mxu1 %v3130_v15  ;;  %2811 = vmatprep.subr.mxu1 %v3130_v15 }
  0xd4   :  { %2815 = vmatprep.mubr.msk.f32.mxu1 %vm3131_vm1, %v3130_v15  ;;  %2812 = vmatpush3.msra.mxu1 %v3292_v45 }
  0xd5   :  { %2813 = vmatprep.subr.mxu1 %v3130_v15 }
  0xd6   :  { %2814 = vmatpush3.msra.mxu1 %v3299_v46 }
  0xd7   :  { %2825 = vmatprep.subr.mxu1 %v3130_v15 }
 0x18f   :  { %v2789_v19 = vpop.f32.mrf.mxu1 }
 0x190   :  { %v227_v20 = vadd.f32 %v2789_v19, %v2642_v18 }
 0x191   :  { %v221_v21 = vpop.f32.mrf.mxu1 }
 0x192   :  { %v222_v22 = vadd.f32 %v2642_v18, %v221_v21  ;;  %v231_v24 = vmax.f32 %v227_v20, 0.0 }
 0x193   :  { %v404_v25 = vpop.f32.mrf.mxu1 }
 0x194   :  { %v230_v23 = vmax.f32 %v222_v22, 0.0 }
 0x195   :  { %v2803_v26 = vpop.f32.mrf.mxu1 }
 0x196   :  { %2794 = vmatprep.mubr.msk.f32.mxu0 %vm56_vm0, %v230_v23 }
 0x197   :  { %2795 = vmatmul.mubr.msk.f32.vlgmr.msra.gmra.mxu0 %vm56_vm0, %v231_v24 }
 0x198   :  { %2808 = vmatprep.mubr.msk.f32.mxu0 %vm3131_vm1, %v3130_v15  ;;  %2805 = vmatpush3.msra.mxu0 %v3282_v43 }
 0x199   :  { %2806 = vmatprep.subr.mxu0 %v3130_v15 }
 0x19a   :  { %2807 = vmatpush3.msra.mxu0 %v3287_v44 }
 0x19b   :  { %2809 = vmatmul.mubr.f32.vlgmr.msra.gmra.mxu0 %v3130_v15  ;;  %2818 = vmatprep.subr.mxu0 %v3130_v15 }
 0x19c   :  { %2819 = vmatpush3.msra.mxu0 %v3242_v16  ;;  %2822 = vmatprep.mubr.msk.f32.mxu0 %vm3131_vm1, %v3130_v15 }
 0x19d   :  { %2820 = vmatprep.subr.mxu0 %v3130_v15 }
 0x19e   :  { %2821 = vmatpush3.msra.mxu0 %v3249_v17 }
 0x19f   :  { %2832 = vmatprep.subr.mxu0 %v3130_v15 }
 0x257   :  { %v2796_v28 = vpop.f32.mrf.mxu0 }
 0x258   :  { %v3269_v29 = vadd.f32 %v2796_v28, %v2645_v27 }
 0x259   :  { %v313_v30 = vpop.f32.mrf.mxu0 }
 0x25a   :  { %v3271_v31 = vadd.f32 %v2645_v27, %v313_v30 }
 0x25b   :  { %v499_v50 = vpop.f32.mrf.mxu0 }
 0x25c   :  { %v408_v32 = vadd.f32 %v404_v25, %v3271_v31 }
 0x25d   :  { %v2810_v51 = vpop.f32.mrf.mxu0 }
 0x25e   :  { %2979 = vtanh.f32 %v408_v32  ;;  %v2649_v34 = vmul.f32 -1.442695, %v408_v32 }
 0x260   :  { %2981 = vpow2.f32 %v2649_v34 }
 0x26b   :  { %v2980_v33 = vpop.eup %2979 }
 0x26c   :  { %418 = vrot.lane.b32.xlu0 %v2980_v33, %s3132_s4 }
 0x26d   :  { %v2982_v35 = vpop.eup %2981 }
 0x26e   :  { %v412_v36 = vadd.f32 1.0, %v2982_v35 }
 0x270   :  { %2983 = vrcp.f32 %v412_v36 }
 0x27d   :  { %v2984_v37 = vpop.eup %2983 }
 0x27e   :  { %v416_v40 = vmul.f32 0.0, %v2984_v37 }
 0x2de   :  { %v419_v38 = vpop.permute.xlu0 %418 }
 0x2df   :  { %v421_v39 = vmul.f32 %v2984_v37, %v419_v38 }
 0x2e1   :  { %423 = vrot.lane.b32.xlu0 %v421_v39, %s3133_s7 }
 0x353   :  { %v424_v41 = vpop.permute.xlu0 %423 }
 0x354   :  { %v3276_v42 = vadd.f32 %v424_v41, %v416_v40 }
 0x356   :  { %2985 = vtanh.f32 %v3276_v42  ;;  %v685_v12 = vrot.slane %v3276_v42, 6 }
 0x363   :  { %v2986_v47 = vpop.eup %2985 }
 0x364   :  { %429 = vrot.lane.b32.xlu1 %v2986_v47, %s3134_s8 }
 0x3d6   :  { %v430_v48 = vpop.permute.xlu1 %429 }
 0x3d7   :  { %v432_v49 = vmul.f32 %v2984_v37, %v430_v48 }
 0x3d9   :  { %504 = vrot.lane.b32.xlu1 %v432_v49, %s3135_s9 }
 0x44b   :  { %v505_v52 = vpop.permute.xlu1 %504 }
 0x44c   :  { %2816 = vmatmul.mubr.msk.f32.vlgmr.msra.gmra.mxu1 %vm56_vm0, %v505_v52  ;;  %2823 = vmatmul.mubr.msk.f32.vlgmr.msra.gmra.mxu0 %vm56_vm0, %v505_v52 }
 0x44d   :  { %2826 = vmatpush3.msra.mxu1 %v3282_v43  ;;  %2833 = vmatpush3.msra.mxu0 %v3292_v45 }
 0x44e   :  { %2827 = vmatprep.subr.mxu1 %v3130_v15  ;;  %2829 = vmatprep.mubr.msk.f32.mxu1 %vm3131_vm1, %v3130_v15 }
 0x44f   :  { %2828 = vmatpush3.msra.mxu1 %v3287_v44  ;;  %2834 = vmatprep.subr.mxu0 %v3130_v15 }
 0x450   :  { %2839 = vmatprep.subr.mxu1 %v3130_v15  ;;  %2835 = vmatpush3.msra.mxu0 %v3299_v46 }
 0x451   :  { %2836 = vmatprep.mubr.msk.f32.mxu0 %vm3131_vm1, %v3130_v15  ;;  %2846 = vmatprep.subr.mxu0 %v3130_v15 }
 0x50c   :  { %v574_v54 = vpop.f32.mrf.mxu1  ;;  %v669_v55 = vpop.f32.mrf.mxu0 }
 0x50d   :  { %v575_v56 = vadd.f32 %v574_v54, %v499_v50  ;;  %v674_v57 = vrot.slane %v669_v55, 6 }
 0x50e   :  { %v2817_v58 = vpop.f32.mrf.mxu1  ;;  %v2824_v59 = vpop.f32.mrf.mxu0 }
 0x50f   :  { %v578_v60 = vadd.f32 %v3333_v53, %v575_v56  ;;  %v676_v61 = vadd.f32 %v674_v57, %v3271_v31 }
 0x511   :  { %2987 = vtanh.f32 %v578_v60  ;;  %v2651_v0 = vmul.f32 -1.442695, %v578_v60  ;;  %v2653_v1 = vmul.f32 -1.442695, %v676_v61 }
 0x512   :  { %2989 = vtanh.f32 %v676_v61 }
 0x513   :  { %2991 = vpow2.f32 %v2651_v0 }
 0x514   :  { %2993 = vpow2.f32 %v2653_v1 }
 0x51e   :  { %v2988_v62 = vpop.eup %2987 }
 0x51f   :  { %v2990_v63 = vpop.eup %2989  ;;  %588 = vrot.lane.b32.xlu0 %v2988_v62, %s3132_s4 }
 0x520   :  { %689 = vrot.lane.b32.xlu1 %v2990_v63, %s3132_s4  ;;  %v2992_v2 = vpop.eup %2991 }
 0x521   :  { %v2994_v3 = vpop.eup %2993  ;;  %v582_v4 = vadd.f32 1.0, %v2992_v2 }
 0x522   :  { %v680_v5 = vadd.f32 1.0, %v2994_v3 }
 0x523   :  { %2995 = vrcp.f32 %v582_v4 }
 0x524   :  { %2997 = vrcp.f32 %v680_v5 }
 0x530   :  { %v2996_v6 = vpop.eup %2995 }
 0x531   :  { %v2998_v8 = vpop.eup %2997  ;;  %v586_v13 = vmul.f32 0.0, %v2996_v6 }
 0x532   :  { %v687_v14 = vmul.f32 %v2998_v8, %v685_v12 }
 0x591   :  { %v589_v7 = vpop.permute.xlu0 %588 }
 0x592   :  { %v690_v9 = vpop.permute.xlu1 %689  ;;  %v591_v10 = vmul.f32 %v2996_v6, %v589_v7 }
 0x593   :  { %v692_v11 = vmul.f32 %v2998_v8, %v690_v9 }
 0x594   :  { %593 = vrot.lane.b32.xlu0 %v591_v10, %s3133_s7 }
 0x595   :  { %694 = vrot.lane.b32.xlu1 %v692_v11, %s3133_s7 }
 0x606   :  { %v594_v18 = vpop.permute.xlu0 %593 }
 0x607   :  { %v695_v19 = vpop.permute.xlu1 %694  ;;  %v3342_v20 = vadd.f32 %v594_v18, %v586_v13 }
 0x608   :  { %v3344_v21 = vadd.f32 %v695_v19, %v687_v14 }
 0x609   :  { %2999 = vtanh.f32 %v3342_v20 }
 0x60a   :  { %3001 = vtanh.f32 %v3344_v21  ;;  %v962_v62 = vrot.slane %v3344_v21, 6 }
 0x616   :  { %v3000_v22 = vpop.eup %2999 }
 0x617   :  { %v3002_v23 = vpop.eup %3001  ;;  %599 = vrot.lane.b32.xlu0 %v3000_v22, %s3134_s8 }
 0x618   :  { %700 = vrot.lane.b32.xlu1 %v3002_v23, %s3134_s8 }
 0x689   :  { %v600_v24 = vpop.permute.xlu0 %599 }
 0x68a   :  { %v701_v25 = vpop.permute.xlu1 %700  ;;  %v602_v26 = vmul.f32 %v2996_v6, %v600_v24 }
 0x68b   :  { %v703_v27 = vmul.f32 %v2998_v8, %v701_v25 }
 0x68c   :  { %705 = vrot.lane.b32.xlu0 %v602_v26, %s3135_s9 }
 0x68d   :  { %v780_v28 = vrot.slane %v703_v27, 2 }
 0x68f   :  { %781 = vrot.lane.b32.xlu1 %v780_v28, %s3135_s9 }
 0x6fe   :  { %v706_v30 = vpop.permute.xlu0 %705 }
 0x6ff   :  { %2830 = vmatmul.mubr.msk.f32.vlgmr.msra.gmra.mxu1 %vm56_vm0, %v706_v30 }
 0x700   :  { %2840 = vmatpush3.msra.mxu1 %v3242_v16  ;;  %2843 = vmatprep.mubr.msk.f32.mxu1 %vm3131_vm1, %v3130_v15 }
 0x701   :  { %v782_v32 = vpop.permute.xlu1 %781  ;;  %2841 = vmatprep.subr.mxu1 %v3130_v15 }
 0x702   :  { %2837 = vmatmul.mubr.msk.f32.vlgmr.msra.gmra.mxu0 %vm56_vm0, %v782_v32  ;;  %2842 = vmatpush3.msra.mxu1 %v3249_v17 }
 0x703   :  { %2844 = vmatmul.mubr.msk.f32.vlgmr.msra.gmra.mxu1 %vm56_vm0, %v782_v32  ;;  %2847 = vmatpush3.msra.mxu0 %v3282_v43 }
 0x704   :  { %2848 = vmatprep.subr.mxu0 %v3130_v15  ;;  %2850 = vmatprep.mubr.msk.f32.mxu0 %vm3131_vm1, %v3130_v15 }
 0x705   :  { %2849 = vmatpush3.msra.mxu0 %v3287_v44  ;;  %2853 = vmatprep.subr.mxu1 %v3130_v15 }
 0x706   :  { %2860 = vmatprep.subr.mxu0 %v3130_v15  ;;  %2854 = vmatpush3.msra.mxu1 %v3292_v45 }
 0x707   :  { %2855 = vmatprep.subr.mxu1 %v3130_v15  ;;  %2857 = vmatprep.mubr.msk.f32.mxu1 %vm3131_vm1, %v3130_v15 }
 0x708   :  { %2856 = vmatpush3.msra.mxu1 %v3299_v46 }
 0x709   :  { %2867 = vmatprep.subr.mxu1 %v3130_v15 }
 0x7bf   :  { %v775_v33 = vpop.f32.mrf.mxu1 }
 0x7c1   :  { %v2831_v34 = vpop.f32.mrf.mxu1 }
 0x7c2   :  { %v851_v35 = vpop.f32.mrf.mxu0 }
 0x7c3   :  { %v852_v36 = vadd.f32 %v851_v35, %v775_v33  ;;  %v946_v37 = vpop.f32.mrf.mxu1 }
 0x7c4   :  { %v2838_v38 = vpop.f32.mrf.mxu0  ;;  %v951_v39 = vrot.slane %v946_v37, 4 }
 0x7c5   :  { %v855_v40 = vadd.f32 %v3333_v53, %v852_v36  ;;  %v2845_v41 = vpop.f32.mrf.mxu1 }
 0x7c6   :  { %v953_v42 = vadd.f32 %v951_v39, %v3271_v31 }
 0x7c7   :  { %3003 = vtanh.f32 %v855_v40  ;;  %v2656_v49 = vmul.f32 -1.442695, %v855_v40 }
 0x7c8   :  { %3005 = vtanh.f32 %v953_v42  ;;  %v2658_v50 = vmul.f32 -1.442695, %v953_v42 }
 0x7c9   :  { %3007 = vpow2.f32 %v2656_v49 }
 0x7ca   :  { %3009 = vpow2.f32 %v2658_v50 }
 0x7d4   :  { %v3004_v47 = vpop.eup %3003 }
 0x7d5   :  { %v3006_v48 = vpop.eup %3005  ;;  %865 = vrot.lane.b32.xlu0 %v3004_v47, %s3132_s4 }
 0x7d6   :  { %966 = vrot.lane.b32.xlu1 %v3006_v48, %s3132_s4  ;;  %v3008_v51 = vpop.eup %3007 }
 0x7d7   :  { %v3010_v52 = vpop.eup %3009  ;;  %v859_v54 = vadd.f32 1.0, %v3008_v51 }
 0x7d8   :  { %v957_v55 = vadd.f32 1.0, %v3010_v52 }
 0x7d9   :  { %3011 = vrcp.f32 %v859_v54 }
 0x7da   :  { %3013 = vrcp.f32 %v957_v55 }
 0x7e6   :  { %v3012_v56 = vpop.eup %3011 }
 0x7e7   :  { %v3014_v58 = vpop.eup %3013  ;;  %v863_v63 = vmul.f32 %v3012_v56, %v3342_v20 }
 0x7e8   :  { %v964_v1 = vmul.f32 %v3014_v58, %v962_v62 }
 0x847   :  { %v866_v57 = vpop.permute.xlu0 %865 }
 0x848   :  { %v868_v59 = vmul.f32 %v3012_v56, %v866_v57  ;;  %v967_v60 = vpop.permute.xlu1 %966 }
 0x849   :  { %v969_v61 = vmul.f32 %v3014_v58, %v967_v60 }
 0x84a   :  { %870 = vrot.lane.b32.xlu0 %v868_v59, %s3133_s7 }
 0x84b   :  { %971 = vrot.lane.b32.xlu1 %v969_v61, %s3133_s7 }
 0x8bc   :  { %v871_v0 = vpop.permute.xlu0 %870 }
 0x8bd   :  { %v3381_v2 = vadd.f32 %v871_v0, %v863_v63  ;;  %v972_v3 = vpop.permute.xlu1 %971 }
 0x8be   :  { %v3383_v4 = vadd.f32 %v972_v3, %v964_v1 }
 0x8bf   :  { %3015 = vtanh.f32 %v3381_v2 }
 0x8c0   :  { %3017 = vtanh.f32 %v3383_v4  ;;  %v1239_v42 = vrot.slane %v3383_v4, 6 }
 0x8cc   :  { %v3016_v5 = vpop.eup %3015 }
 0x8cd   :  { %v3018_v6 = vpop.eup %3017  ;;  %876 = vrot.lane.b32.xlu0 %v3016_v5, %s3134_s8 }
 0x8ce   :  { %977 = vrot.lane.b32.xlu1 %v3018_v6, %s3134_s8 }
 0x93f   :  { %v877_v7 = vpop.permute.xlu0 %876 }
 0x940   :  { %v879_v8 = vmul.f32 %v3012_v56, %v877_v7  ;;  %v978_v9 = vpop.permute.xlu1 %977 }
 0x941   :  { %v980_v10 = vmul.f32 %v3014_v58, %v978_v9 }
 0x942   :  { %982 = vrot.lane.b32.xlu0 %v879_v8, %s3135_s9 }
 0x943   :  { %v1057_v11 = vrot.slane %v980_v10, 4 }
 0x945   :  { %1058 = vrot.lane.b32.xlu1 %v1057_v11, %s3135_s9 }
 0x9b4   :  { %v983_v12 = vpop.permute.xlu0 %982 }
 0x9b5   :  { %2851 = vmatmul.mubr.msk.f32.vlgmr.msra.gmra.mxu0 %vm56_vm0, %v983_v12 }
 0x9b6   :  { %2861 = vmatpush3.msra.mxu0 %v3242_v16  ;;  %2864 = vmatprep.mubr.msk.f32.mxu0 %vm3131_vm1, %v3130_v15 }
 0x9b7   :  { %2862 = vmatprep.subr.mxu0 %v3130_v15  ;;  %v1059_v13 = vpop.permute.xlu1 %1058 }
 0x9b8   :  { %2863 = vmatpush3.msra.mxu0 %v3249_v17  ;;  %2858 = vmatmul.mubr.msk.f32.vlgmr.msra.gmra.mxu1 %vm56_vm0, %v1059_v13 }
 0x9b9   :  { %2865 = vmatmul.mubr.msk.f32.vlgmr.msra.gmra.mxu0 %vm56_vm0, %v1059_v13  ;;  %2868 = vmatpush3.msra.mxu1 %v3282_v43 }
 0x9ba   :  { %2874 = vmatprep.subr.mxu0 %v3130_v15  ;;  %2869 = vmatprep.subr.mxu1 %v3130_v15 }
 0x9bb   :  { %2875 = vmatpush3.msra.mxu0 %v3292_v45  ;;  %2870 = vmatpush3.msra.mxu1 %v3287_v44 }
 0x9bc   :  { %2871 = vmatprep.mubr.msk.f32.mxu1 %vm3131_vm1, %v3130_v15  ;;  %2876 = vmatprep.subr.mxu0 %v3130_v15 }
 0x9bd   :  { %2877 = vmatpush3.msra.mxu0 %v3299_v46  ;;  %2881 = vmatprep.subr.mxu1 %v3130_v15 }
 0x9be   :  { %2878 = vmatprep.mubr.msk.f32.mxu0 %vm3131_vm1, %v3130_v15  ;;  %2888 = vmatprep.subr.mxu0 %v3130_v15 }
 0xa75   :  { %v1052_v14 = vpop.f32.mrf.mxu0 }
 0xa77   :  { %v2852_v18 = vpop.f32.mrf.mxu0 }
 0xa78   :  { %v1128_v19 = vpop.f32.mrf.mxu1 }
 0xa79   :  { %v1129_v20 = vadd.f32 %v1128_v19, %v1052_v14  ;;  %v1223_v21 = vpop.f32.mrf.mxu0 }
 0xa7a   :  { %v1228_v22 = vrot.slane %v1223_v21, 2  ;;  %v2859_v23 = vpop.f32.mrf.mxu1 }
 0xa7b   :  { %v1132_v24 = vadd.f32 %v3333_v53, %v1129_v20  ;;  %v2866_v25 = vpop.f32.mrf.mxu0 }
 0xa7c   :  { %v1230_v26 = vadd.f32 %v1228_v22, %v3271_v31 }
 0xa7d   :  { %3019 = vtanh.f32 %v1132_v24  ;;  %v2661_v30 = vmul.f32 -1.442695, %v1132_v24 }
 0xa7e   :  { %3021 = vtanh.f32 %v1230_v26  ;;  %v2663_v32 = vmul.f32 -1.442695, %v1230_v26 }
 0xa7f   :  { %3023 = vpow2.f32 %v2661_v30 }
 0xa80   :  { %3025 = vpow2.f32 %v2663_v32 }
 0xa8a   :  { %v3020_v27 = vpop.eup %3019 }
 0xa8b   :  { %v3022_v28 = vpop.eup %3021  ;;  %1142 = vrot.lane.b32.xlu1 %v3020_v27, %s3132_s4 }
 0xa8c   :  { %1243 = vrot.lane.b32.xlu0 %v3022_v28, %s3132_s4  ;;  %v3024_v33 = vpop.eup %3023 }
 0xa8d   :  { %v3026_v34 = vpop.eup %3025  ;;  %v1136_v35 = vadd.f32 1.0, %v3024_v33 }
 0xa8e   :  { %v1234_v36 = vadd.f32 1.0, %v3026_v34 }
 0xa8f   :  { %3027 = vrcp.f32 %v1136_v35 }
 0xa90   :  { %3029 = vrcp.f32 %v1234_v36 }
 0xa9c   :  { %v3028_v37 = vpop.eup %3027 }
 0xa9d   :  { %v3030_v38 = vpop.eup %3029  ;;  %v1140_v47 = vmul.f32 %v3028_v37, %v3381_v2 }
 0xa9e   :  { %v1241_v48 = vmul.f32 %v3030_v38, %v1239_v42 }
 0xafd   :  { %v1143_v31 = vpop.permute.xlu1 %1142 }
 0xafe   :  { %v1244_v39 = vpop.permute.xlu0 %1243  ;;  %v1145_v40 = vmul.f32 %v3028_v37, %v1143_v31 }
 0xaff   :  { %v1246_v41 = vmul.f32 %v3030_v38, %v1244_v39 }
 0xb00   :  { %1147 = vrot.lane.b32.xlu1 %v1145_v40, %s3133_s7 }
 0xb01   :  { %1248 = vrot.lane.b32.xlu0 %v1246_v41, %s3133_s7 }
 0xb72   :  { %v1148_v49 = vpop.permute.xlu1 %1147 }
 0xb73   :  { %v1249_v50 = vpop.permute.xlu0 %1248  ;;  %v3420_v51 = vadd.f32 %v1148_v49, %v1140_v47 }
 0xb74   :  { %v3422_v52 = vadd.f32 %v1249_v50, %v1241_v48 }
 0xb75   :  { %3031 = vtanh.f32 %v3420_v51 }
 0xb76   :  { %3033 = vtanh.f32 %v3422_v52  ;;  %v1513_v25 = vrot.slane %v3422_v52, 6 }
 0xb82   :  { %v3032_v54 = vpop.eup %3031 }
 0xb83   :  { %v3034_v55 = vpop.eup %3033  ;;  %1153 = vrot.lane.b32.xlu1 %v3032_v54, %s3134_s8 }
 0xb84   :  { %1254 = vrot.lane.b32.xlu0 %v3034_v55, %s3134_s8 }
 0xbf5   :  { %v1154_v56 = vpop.permute.xlu1 %1153 }
 0xbf6   :  { %v1255_v57 = vpop.permute.xlu0 %1254  ;;  %v1156_v58 = vmul.f32 %v3028_v37, %v1154_v56 }
 0xbf7   :  { %v1257_v59 = vmul.f32 %v3030_v38, %v1255_v57 }
 0xbf8   :  { %1259 = vrot.lane.b32.xlu0 %v1156_v58, %s3135_s9 }
 0xbf9   :  { %v1334_v60 = vrot.slane %v1257_v59, 6 }
 0xbfb   :  { %1335 = vrot.lane.b32.xlu1 %v1334_v60, %s3135_s9 }
 0xc6a   :  { %v1260_v61 = vpop.permute.xlu0 %1259 }
 0xc6b   :  { %2872 = vmatmul.mubr.msk.f32.vlgmr.msra.gmra.mxu1 %vm56_vm0, %v1260_v61 }
 0xc6c   :  { %2882 = vmatpush3.msra.mxu1 %v3242_v16  ;;  %2885 = vmatprep.mubr.msk.f32.mxu1 %vm3131_vm1, %v3130_v15 }
 0xc6d   :  { %v1336_v62 = vpop.permute.xlu1 %1335  ;;  %2883 = vmatprep.subr.mxu1 %v3130_v15 }
 0xc6e   :  { %2879 = vmatmul.mubr.msk.f32.vlgmr.msra.gmra.mxu0 %vm56_vm0, %v1336_v62  ;;  %2884 = vmatpush3.msra.mxu1 %v3249_v17 }
 0xc6f   :  { %2886 = vmatmul.mubr.msk.f32.vlgmr.msra.gmra.mxu1 %vm56_vm0, %v1336_v62  ;;  %2889 = vmatpush3.msra.mxu0 %v3282_v43 }
 0xc70   :  { %2895 = vmatprep.subr.mxu1 %v3130_v15  ;;  %2890 = vmatprep.subr.mxu0 %v3130_v15 }
 0xc71   :  { %2896 = vmatpush3.msra.mxu1 %v3292_v45  ;;  %2891 = vmatpush3.msra.mxu0 %v3287_v44 }
 0xc72   :  { %2897 = vmatprep.subr.mxu1 %v3130_v15  ;;  %2892 = vmatprep.mubr.msk.f32.mxu0 %vm3131_vm1, %v3130_v15 }
 0xc73   :  { %2898 = vmatpush3.msra.mxu1 %v3299_v46  ;;  %2899 = vmatprep.mubr.msk.f32.mxu1 %vm3131_vm1, %v3130_v15 }
 0xc74   :  { %2902 = vmatprep.subr.mxu0 %v3130_v15  ;;  %2909 = vmatprep.subr.mxu1 %v3130_v15 }
 0xd2b   :  { %v1329_v63 = vpop.f32.mrf.mxu1 }
 0xd2d   :  { %v2873_v0 = vpop.f32.mrf.mxu1 }
 0xd2e   :  { %v1405_v1 = vpop.f32.mrf.mxu0 }
 0xd2f   :  { %v1406_v2 = vadd.f32 %v1405_v1, %v1329_v63  ;;  %v1500_v3 = vpop.f32.mrf.mxu1 }
 0xd30   :  { %v2880_v4 = vpop.f32.mrf.mxu0  ;;  %v1504_v5 = vadd.f32 %v1500_v3, %v3269_v29 }
 0xd31   :  { %v1409_v6 = vadd.f32 %v3333_v53, %v1406_v2  ;;  %v2887_v7 = vpop.f32.mrf.mxu1 }
 0xd32   :  { %3035 = vtanh.f32 %v1504_v5  ;;  %v2668_v10 = vmul.f32 -1.442695, %v1504_v5 }
 0xd33   :  { %3037 = vtanh.f32 %v1409_v6  ;;  %v2666_v11 = vmul.f32 -1.442695, %v1409_v6 }
 0xd34   :  { %3039 = vpow2.f32 %v2668_v10 }
 0xd35   :  { %3041 = vpow2.f32 %v2666_v11 }
 0xd3f   :  { %v3036_v8 = vpop.eup %3035 }
 0xd40   :  { %v3038_v9 = vpop.eup %3037  ;;  %1517 = vrot.lane.b32.xlu1 %v3036_v8, %s3132_s4 }
 0xd41   :  { %1419 = vrot.lane.b32.xlu0 %v3038_v9, %s3132_s4  ;;  %v3040_v12 = vpop.eup %3039 }
 0xd42   :  { %v3042_v13 = vpop.eup %3041  ;;  %v1508_v14 = vadd.f32 1.0, %v3040_v12 }
 0xd43   :  { %v1413_v18 = vadd.f32 1.0, %v3042_v13 }
 0xd44   :  { %3043 = vrcp.f32 %v1508_v14 }
 0xd45   :  { %3045 = vrcp.f32 %v1413_v18 }
 0xd51   :  { %v3044_v19 = vpop.eup %3043 }
 0xd52   :  { %v3046_v21 = vpop.eup %3045  ;;  %v1515_v26 = vmul.f32 %v3044_v19, %v1513_v25 }
 0xd53   :  { %v1417_v27 = vmul.f32 %v3046_v21, %v3420_v51 }
 0xdb2   :  { %v1518_v20 = vpop.permute.xlu1 %1517 }
 0xdb3   :  { %v1420_v22 = vpop.permute.xlu0 %1419  ;;  %v1520_v23 = vmul.f32 %v3044_v19, %v1518_v20 }
 0xdb4   :  { %v1422_v24 = vmul.f32 %v3046_v21, %v1420_v22 }
 0xdb5   :  { %1522 = vrot.lane.b32.xlu1 %v1520_v23, %s3133_s7 }
 0xdb6   :  { %1424 = vrot.lane.b32.xlu0 %v1422_v24, %s3133_s7 }
 0xe27   :  { %v1523_v28 = vpop.permute.xlu1 %1522 }
 0xe28   :  { %v1425_v30 = vpop.permute.xlu0 %1424  ;;  %v3459_v32 = vadd.f32 %v1523_v28, %v1515_v26 }
 0xe29   :  { %v3461_v33 = vadd.f32 %v1425_v30, %v1417_v27 }
 0xe2a   :  { %3047 = vtanh.f32 %v3459_v32  ;;  %v1789_v8 = vrot.slane %v3459_v32, 6 }
 0xe2b   :  { %3049 = vtanh.f32 %v3461_v33 }
 0xe37   :  { %v3048_v34 = vpop.eup %3047 }
 0xe38   :  { %v3050_v35 = vpop.eup %3049  ;;  %1528 = vrot.lane.b32.xlu1 %v3048_v34, %s3134_s8 }
 0xe39   :  { %1430 = vrot.lane.b32.xlu0 %v3050_v35, %s3134_s8 }
 0xeaa   :  { %v1529_v36 = vpop.permute.xlu1 %1528 }
 0xeab   :  { %v1431_v37 = vpop.permute.xlu0 %1430  ;;  %v1531_v31 = vmul.f32 %v3044_v19, %v1529_v36 }
 0xeac   :  { %v1433_v38 = vmul.f32 %v3046_v21, %v1431_v37 }
 0xead   :  { %1608 = vrot.lane.b32.xlu1 %v1531_v31, %s3135_s9 }
 0xeae   :  { %1533 = vrot.lane.b32.xlu0 %v1433_v38, %s3135_s9 }
 0xf1f   :  { %v1609_v39 = vpop.permute.xlu1 %1608 }
 0xf20   :  { %v1534_v40 = vpop.permute.xlu0 %1533  ;;  %2900 = vmatmul.mubr.msk.f32.vlgmr.msra.gmra.mxu1 %vm56_vm0, %v1609_v39 }
 0xf21   :  { %2893 = vmatmul.mubr.msk.f32.vlgmr.msra.gmra.mxu0 %vm56_vm0, %v1534_v40  ;;  %2910 = vmatpush3.msra.mxu1 %v3282_v43 }
 0xf22   :  { %2903 = vmatpush3.msra.mxu0 %v3242_v16  ;;  %2906 = vmatprep.mubr.msk.f32.mxu0 %vm3131_vm1, %v3130_v15 }
 0xf23   :  { %2904 = vmatprep.subr.mxu0 %v3130_v15  ;;  %2911 = vmatprep.subr.mxu1 %v3130_v15 }
 0xf24   :  { %2905 = vmatpush3.msra.mxu0 %v3249_v17  ;;  %2912 = vmatpush3.msra.mxu1 %v3287_v44 }
 0xf25   :  { %2907 = vmatmul.mubr.msk.f32.vlgmr.msra.gmra.mxu0 %vm56_vm0, %v1609_v39  ;;  %2913 = vmatprep.mubr.msk.f32.mxu1 %vm3131_vm1, %v3130_v15 }
 0xf26   :  { %2916 = vmatprep.subr.mxu0 %v3130_v15  ;;  %2923 = vmatprep.subr.mxu1 %v3130_v15 }
 0xf27   :  { %2917 = vmatpush3.msra.mxu0 %v3292_v45  ;;  %2920 = vmatprep.mubr.msk.f32.mxu0 %vm3131_vm1, %v3130_v15 }
 0xf28   :  { %2918 = vmatprep.subr.mxu0 %v3130_v15 }
 0xf29   :  { %2919 = vmatpush3.msra.mxu0 %v3299_v46 }
 0xf2a   :  { %2930 = vmatprep.subr.mxu0 %v3130_v15 }
 0xfe0   :  { %v1678_v41 = vpop.f32.mrf.mxu1 }
 0xfe1   :  { %v1603_v42 = vpop.f32.mrf.mxu0 }
 0xfe2   :  { %v1679_v47 = vadd.f32 %v1678_v41, %v1603_v42  ;;  %v2901_v48 = vpop.f32.mrf.mxu1 }
 0xfe3   :  { %v2894_v49 = vpop.f32.mrf.mxu0 }
 0xfe4   :  { %v1682_v50 = vadd.f32 %v3333_v53, %v1679_v47 }
 0xfe5   :  { %v1773_v51 = vpop.f32.mrf.mxu0 }
 0xfe6   :  { %3051 = vtanh.f32 %v1682_v50  ;;  %v1778_v52 = vrot.slane %v1773_v51, 6  ;;  %v2671_v58 = vmul.f32 -1.442695, %v1682_v50 }
 0xfe7   :  { %v2908_v54 = vpop.f32.mrf.mxu0 }
 0xfe8   :  { %v1780_v55 = vadd.f32 %v1778_v52, %v3269_v29 }
 0xfea   :  { %3053 = vtanh.f32 %v1780_v55  ;;  %v2673_v59 = vmul.f32 -1.442695, %v1780_v55 }
 0xfeb   :  { %3055 = vpow2.f32 %v2671_v58 }
 0xfec   :  { %3057 = vpow2.f32 %v2673_v59 }
 0xff3   :  { %v3052_v56 = vpop.eup %3051 }
 0xff4   :  { %1692 = vrot.lane.b32.xlu0 %v3052_v56, %s3132_s4 }
 0xff7   :  { %v3054_v57 = vpop.eup %3053 }
 0xff8   :  { %1793 = vrot.lane.b32.xlu1 %v3054_v57, %s3132_s4  ;;  %v3056_v60 = vpop.eup %3055 }
 0xff9   :  { %v1686_v61 = vadd.f32 1.0, %v3056_v60  ;;  %v3058_v62 = vpop.eup %3057 }
 0xffa   :  { %v1784_v63 = vadd.f32 1.0, %v3058_v62 }
 0xffb   :  { %3059 = vrcp.f32 %v1686_v61 }
 0xffc   :  { %3061 = vrcp.f32 %v1784_v63 }
0x1008   :  { %v3060_v0 = vpop.eup %3059 }
0x1009   :  { %v3062_v3 = vpop.eup %3061  ;;  %v1690_v6 = vmul.f32 %v3060_v0, %v3461_v33 }
0x100a   :  { %v1791_v10 = vmul.f32 %v3062_v3, %v1789_v8 }
0x1066   :  { %v1693_v1 = vpop.permute.xlu0 %1692 }
0x1067   :  { %v1695_v2 = vmul.f32 %v3060_v0, %v1693_v1 }
0x1069   :  { %1697 = vrot.lane.b32.xlu0 %v1695_v2, %s3133_s7 }
0x106a   :  { %v1794_v4 = vpop.permute.xlu1 %1793 }
0x106b   :  { %v1796_v5 = vmul.f32 %v3062_v3, %v1794_v4 }
0x106d   :  { %1798 = vrot.lane.b32.xlu1 %v1796_v5, %s3133_s7 }
0x10db   :  { %v1698_v7 = vpop.permute.xlu0 %1697 }
0x10dc   :  { %v3498_v9 = vadd.f32 %v1698_v7, %v1690_v6  ;;  %v3107_v6 = vld [vmem:[%s3610_s6] sm:$0xff] }
0x10de   :  { %3063 = vtanh.f32 %v3498_v9 }
0x10df   :  { %v1799_v11 = vpop.permute.xlu1 %1798 }
0x10e0   :  { %v3501_v12 = vadd.f32 %v1799_v11, %v1791_v10 }
0x10e2   :  { %3065 = vtanh.f32 %v3501_v12  ;;  %v2066_v54 = vrot.slane %v3501_v12, 6 }
0x10eb   :  { %v3064_v13 = vpop.eup %3063 }
0x10ec   :  { %1703 = vrot.lane.b32.xlu0 %v3064_v13, %s3134_s8 }
0x10ef   :  { %v3066_v14 = vpop.eup %3065 }
0x10f0   :  { %1804 = vrot.lane.b32.xlu1 %v3066_v14, %s3134_s8 }
0x115e   :  { %v1704_v18 = vpop.permute.xlu0 %1703 }
0x115f   :  { %v1706_v19 = vmul.f32 %v3060_v0, %v1704_v18 }
0x1161   :  { %1809 = vrot.lane.b32.xlu0 %v1706_v19, %s3135_s9 }
0x1162   :  { %v1805_v20 = vpop.permute.xlu1 %1804 }
0x1163   :  { %v1807_v21 = vmul.f32 %v3062_v3, %v1805_v20 }
0x1165   :  { %v1884_v22 = vrot.slane %v1807_v21, 2 }
0x1167   :  { %1885 = vrot.lane.b32.xlu1 %v1884_v22, %s3135_s9 }
0x11d3   :  { %v1810_v23 = vpop.permute.xlu0 %1809 }
0x11d4   :  { %2914 = vmatmul.mubr.msk.f32.vlgmr.msra.gmra.mxu1 %vm56_vm0, %v1810_v23 }
0x11d5   :  { %2924 = vmatpush3.msra.mxu1 %v3242_v16  ;;  %2927 = vmatprep.mubr.msk.f32.mxu1 %vm3131_vm1, %v3130_v15 }
0x11d6   :  { %2925 = vmatprep.subr.mxu1 %v3130_v15 }
0x11d7   :  { %2926 = vmatpush3.msra.mxu1 %v3249_v17 }
0x11d8   :  { %2937 = vmatprep.subr.mxu1 %v3130_v15 }
0x11d9   :  { %v1886_v24 = vpop.permute.xlu1 %1885 }
0x11da   :  { %2921 = vmatmul.mubr.msk.f32.vlgmr.msra.gmra.mxu0 %vm56_vm0, %v1886_v24  ;;  %2928 = vmatmul.mubr.msk.f32.vlgmr.msra.gmra.mxu1 %vm56_vm0, %v1886_v24 }
0x11db   :  { %2931 = vmatpush3.msra.mxu0 %v3282_v43  ;;  %2934 = vmatprep.mubr.msk.f32.mxu0 %vm3131_vm1, %v3130_v15 }
0x11dc   :  { %2932 = vmatprep.subr.mxu0 %v3130_v15  ;;  %2938 = vmatpush3.msra.mxu1 %v3292_v45 }
0x11dd   :  { %2933 = vmatpush3.msra.mxu0 %v3287_v44  ;;  %2939 = vmatprep.subr.mxu1 %v3130_v15 }
0x11de   :  { %2944 = vmatprep.subr.mxu0 %v3130_v15  ;;  %2940 = vmatpush3.msra.mxu1 %v3299_v46 }
0x11df   :  { %2941 = vmatprep.mubr.msk.f32.mxu1 %vm3131_vm1, %v3130_v15  ;;  %2951 = vmatprep.subr.mxu1 %v3130_v15 }
0x1294   :  { %v1879_v17 = vpop.f32.mrf.mxu1 }
0x1296   :  { %v2915_v25 = vpop.f32.mrf.mxu1 }
0x129a   :  { %v1955_v26 = vpop.f32.mrf.mxu0  ;;  %v2050_v27 = vpop.f32.mrf.mxu1 }
0x129b   :  { %v1956_v28 = vadd.f32 %v1955_v26, %v1879_v17  ;;  %v2055_v30 = vrot.slane %v2050_v27, 4 }
0x129c   :  { %v2922_v32 = vpop.f32.mrf.mxu0  ;;  %v2929_v33 = vpop.f32.mrf.mxu1 }
0x129d   :  { %v1959_v34 = vadd.f32 %v3333_v53, %v1956_v28  ;;  %v2057_v35 = vadd.f32 %v2055_v30, %v3269_v29 }
0x129f   :  { %3067 = vtanh.f32 %v1959_v34  ;;  %v2676_v31 = vmul.f32 -1.442695, %v1959_v34  ;;  %v2678_v38 = vmul.f32 -1.442695, %v2057_v35 }
0x12a0   :  { %3069 = vtanh.f32 %v2057_v35 }
0x12a1   :  { %3071 = vpow2.f32 %v2676_v31 }
0x12a2   :  { %3073 = vpow2.f32 %v2678_v38 }
0x12ac   :  { %v3068_v36 = vpop.eup %3067 }
0x12ad   :  { %v3070_v37 = vpop.eup %3069  ;;  %1969 = vrot.lane.b32.xlu0 %v3068_v36, %s3132_s4 }
0x12ae   :  { %2070 = vrot.lane.b32.xlu1 %v3070_v37, %s3132_s4  ;;  %v3072_v39 = vpop.eup %3071 }
0x12af   :  { %v3074_v40 = vpop.eup %3073  ;;  %v1963_v41 = vadd.f32 1.0, %v3072_v39 }
0x12b0   :  { %v2061_v42 = vadd.f32 1.0, %v3074_v40 }
0x12b1   :  { %3075 = vrcp.f32 %v1963_v41 }
0x12b2   :  { %3077 = vrcp.f32 %v2061_v42 }
0x12be   :  { %v3076_v47 = vpop.eup %3075 }
0x12bf   :  { %v3078_v49 = vpop.eup %3077  ;;  %v1967_v55 = vmul.f32 %v3076_v47, %v3498_v9 }
0x12c0   :  { %v2068_v57 = vmul.f32 %v3078_v49, %v2066_v54 }
0x131f   :  { %v1970_v48 = vpop.permute.xlu0 %1969 }
0x1320   :  { %v1972_v50 = vmul.f32 %v3076_v47, %v1970_v48  ;;  %v2071_v51 = vpop.permute.xlu1 %2070 }
0x1321   :  { %v2073_v52 = vmul.f32 %v3078_v49, %v2071_v51 }
0x1322   :  { %1974 = vrot.lane.b32.xlu0 %v1972_v50, %s3133_s7 }
0x1323   :  { %2075 = vrot.lane.b32.xlu1 %v2073_v52, %s3133_s7 }
0x1394   :  { %v1975_v56 = vpop.permute.xlu0 %1974 }
0x1395   :  { %v3537_v58 = vadd.f32 %v1975_v56, %v1967_v55  ;;  %v2076_v59 = vpop.permute.xlu1 %2075 }
0x1396   :  { %v3539_v60 = vadd.f32 %v2076_v59, %v2068_v57 }
0x1397   :  { %3079 = vtanh.f32 %v3537_v58 }
0x1398   :  { %3081 = vtanh.f32 %v3539_v60  ;;  %v2343_v27 = vrot.slane %v3539_v60, 6 }
0x13a4   :  { %v3080_v61 = vpop.eup %3079 }
0x13a5   :  { %v3082_v62 = vpop.eup %3081  ;;  %1980 = vrot.lane.b32.xlu0 %v3080_v61, %s3134_s8 }
0x13a6   :  { %2081 = vrot.lane.b32.xlu1 %v3082_v62, %s3134_s8 }
0x1417   :  { %v1981_v63 = vpop.permute.xlu0 %1980 }
0x1418   :  { %v1983_v0 = vmul.f32 %v3076_v47, %v1981_v63  ;;  %v2082_v1 = vpop.permute.xlu1 %2081 }
0x1419   :  { %v2084_v2 = vmul.f32 %v3078_v49, %v2082_v1  ;;  %v2538_v1 = vld [vmem:[%s3615_s11] sm:$0xff] }
0x141a   :  { %2086 = vrot.lane.b32.xlu0 %v1983_v0, %s3135_s9 }
0x141b   :  { %v2161_v3 = vrot.slane %v2084_v2, 4 }
0x141d   :  { %2162 = vrot.lane.b32.xlu1 %v2161_v3, %s3135_s9 }
0x148c   :  { %v2087_v4 = vpop.permute.xlu0 %2086 }
0x148d   :  { %2935 = vmatmul.mubr.msk.f32.vlgmr.msra.gmra.mxu0 %vm56_vm0, %v2087_v4 }
0x148e   :  { %2945 = vmatpush3.msra.mxu0 %v3242_v16  ;;  %2948 = vmatprep.mubr.msk.f32.mxu0 %vm3131_vm1, %v3130_v15 }
0x148f   :  { %2946 = vmatprep.subr.mxu0 %v3130_v15  ;;  %v2163_v5 = vpop.permute.xlu1 %2162 }
0x1490   :  { %2942 = vmatmul.mubr.msk.f32.vlgmr.msra.gmra.mxu1 %vm56_vm0, %v2163_v5  ;;  %2947 = vmatpush3.msra.mxu0 %v3107_v6  ;;  %v2687_v6 = vld [vmem:[%s3616_s12] ss:$0 sm:$0xff] }
0x1491   :  { %2949 = vmatmul.mubr.msk.f32.vlgmr.msra.gmra.mxu0 %vm56_vm0, %v2163_v5  ;;  %2952 = vmatpush3.msra.mxu1 %v3282_v43 }
0x1492   :  { %2953 = vmatprep.subr.mxu1 %v3130_v15  ;;  %2955 = vmatprep.mubr.msk.f32.mxu1 %vm3131_vm1, %v3130_v15 }
0x1493   :  { %2954 = vmatpush3.msra.mxu1 %v3287_v44  ;;  %2958 = vmatprep.subr.mxu0 %v3130_v15 }
0x1494   :  { %2959 = vmatpush3.msra.mxu0 %v3292_v45  ;;  %2962 = vmatprep.mubr.msk.f32.mxu0 %vm3131_vm1, %v3130_v15 }
0x1495   :  { %2960 = vmatprep.subr.mxu0 %v3130_v15  ;;  %2965 = vmatprep.subr.mxu1 %v3130_v15 }
0x1496   :  { %2961 = vmatpush3.msra.mxu0 %v3299_v46 }
0x154d   :  { %v2156_v16 = vpop.f32.mrf.mxu0 }
0x154f   :  { %v2936_v43 = vpop.f32.mrf.mxu0 }
0x1550   :  { %v2232_v7 = vpop.f32.mrf.mxu1 }
0x1551   :  { %v2233_v8 = vadd.f32 %v2232_v7, %v2156_v16  ;;  %v2327_v9 = vpop.f32.mrf.mxu0 }
0x1552   :  { %v2943_v10 = vpop.f32.mrf.mxu1  ;;  %v2332_v44 = vrot.slane %v2327_v9, 2 }
0x1553   :  { %v2236_v11 = vadd.f32 %v3333_v53, %v2233_v8  ;;  %v2950_v12 = vpop.f32.mrf.mxu0 }
0x1554   :  { %v2334_v45 = vadd.f32 %v2332_v44, %v3269_v29 }
0x1555   :  { %3083 = vtanh.f32 %v2236_v11  ;;  %v2681_v46 = vmul.f32 -1.442695, %v2236_v11 }
0x1556   :  { %3085 = vtanh.f32 %v2334_v45  ;;  %v2683_v18 = vmul.f32 -1.442695, %v2334_v45 }
0x1557   :  { %3087 = vpow2.f32 %v2681_v46 }
0x1558   :  { %3089 = vpow2.f32 %v2683_v18 }
0x1562   :  { %v3084_v13 = vpop.eup %3083 }
0x1563   :  { %v3086_v14 = vpop.eup %3085  ;;  %2246 = vrot.lane.b32.xlu1 %v3084_v13, %s3132_s4 }
0x1564   :  { %2347 = vrot.lane.b32.xlu0 %v3086_v14, %s3132_s4  ;;  %v3088_v19 = vpop.eup %3087 }
0x1565   :  { %v3090_v20 = vpop.eup %3089  ;;  %v2240_v21 = vadd.f32 1.0, %v3088_v19 }
0x1566   :  { %v2338_v22 = vadd.f32 1.0, %v3090_v20 }
0x1567   :  { %3091 = vrcp.f32 %v2240_v21 }
0x1568   :  { %3093 = vrcp.f32 %v2338_v22 }
0x1574   :  { %v3092_v23 = vpop.eup %3091 }
0x1575   :  { %v3094_v24 = vpop.eup %3093  ;;  %v2244_v28 = vmul.f32 %v3092_v23, %v3537_v58 }
0x1576   :  { %v2345_v32 = vmul.f32 %v3094_v24, %v2343_v27 }
0x15d5   :  { %v2247_v29 = vpop.permute.xlu1 %2246 }
0x15d6   :  { %v2249_v17 = vmul.f32 %v3092_v23, %v2247_v29  ;;  %v2348_v25 = vpop.permute.xlu0 %2347 }
0x15d7   :  { %v2350_v26 = vmul.f32 %v3094_v24, %v2348_v25 }
0x15d8   :  { %2251 = vrot.lane.b32.xlu1 %v2249_v17, %s3133_s7 }
0x15d9   :  { %2352 = vrot.lane.b32.xlu0 %v2350_v26, %s3133_s7 }
0x164a   :  { %v2252_v30 = vpop.permute.xlu1 %2251 }
0x164b   :  { %v2254_v33 = vadd.f32 %v2252_v30, %v2244_v28  ;;  %v2353_v34 = vpop.permute.xlu0 %2352 }
0x164c   :  { %v2355_v35 = vadd.f32 %v2353_v34, %v2345_v32 }
0x164d   :  { %3095 = vtanh.f32 %v2254_v33 }
0x164e   :  { %3097 = vtanh.f32 %v2355_v35 }
0x165a   :  { %v3096_v36 = vpop.eup %3095 }
0x165b   :  { %v3098_v37 = vpop.eup %3097  ;;  %2257 = vrot.lane.b32.xlu1 %v3096_v36, %s3134_s8 }
0x165c   :  { %2358 = vrot.lane.b32.xlu0 %v3098_v37, %s3134_s8 }
0x16cd   :  { %v2258_v31 = vpop.permute.xlu1 %2257 }
0x16ce   :  { %v2260_v38 = vmul.f32 %v3092_v23, %v2258_v31  ;;  %v2359_v39 = vpop.permute.xlu0 %2358 }
0x16cf   :  { %v2361_v40 = vmul.f32 %v3094_v24, %v2359_v39 }
0x16d0   :  { %2363 = vrot.lane.b32.xlu0 %v2260_v38, %s3135_s9 }
0x16d1   :  { %v2438_v41 = vrot.slane %v2361_v40, 6 }
0x16d3   :  { %2439 = vrot.lane.b32.xlu1 %v2438_v41, %s3135_s9 }
0x1742   :  { %v2364_v42 = vpop.permute.xlu0 %2363 }
0x1743   :  { %2956 = vmatmul.mubr.msk.f32.vlgmr.msra.gmra.mxu1 %vm56_vm0, %v2364_v42 }
0x1744   :  { %2969 = vmatprep.mubr.msk.f32.mxu1 %vm3131_vm1, %v3130_v15 }
0x1745   :  { %v2440_v47 = vpop.permute.xlu1 %2439 }
0x1746   :  { %2963 = vmatmul.mubr.msk.f32.vlgmr.msra.gmra.mxu0 %vm56_vm0, %v2440_v47 }
0x1803   :  { %v2433_v48 = vpop.f32.mrf.mxu1 }
0x1805   :  { %v2957_v49 = vpop.f32.mrf.mxu1 }
0x1806   :  { %v2509_v50 = vpop.f32.mrf.mxu0 }
0x1807   :  { %v2510_v51 = vadd.f32 %v2509_v50, %v2433_v48 }
0x1808   :  { %v2964_v52 = vpop.f32.mrf.mxu0 }
0x1809   :  { %v2513_v54 = vadd.f32 %v3333_v53, %v2510_v51  ;;  %v2539_v53 = vld [vmem:[%s3615_s11 + $0x8] sm:$0xff]  ;;  %s3136_s11 = smov [#allocation2]  }
0x180a   :  { %2966 = vmatpush3.msra.mxu1 %v2539_v53  ;;  %s2631_s24 = sshll.u32 %s3136_s11, 4  ;;  %s2632_s24 = int_to_ptr.vmem [resolvable:$true] %s2631_s24 }
0x180b   :  { %3099 = vtanh.f32 %v2513_v54  ;;  %v2686_v56 = vmul.f32 -1.442695, %v2513_v54  ;;  %2967 = vmatprep.subr.mxu1 %v3130_v15  ;;  %s3108_s25 = scalar_lea.vmem %s2632_s24, 32  ;;  %p3113_p1 = scmp.lt.s32.totalorder %s2632_s24, %s2632_s24 }
0x180c   :  { %2968 = vmatpush3.msra.mxu1 %v2538_v1  ;;  %p3109_p0 = scmp.ne.s32.totalorder %s2632_s24, %s3108_s25  ;;  %p3114_p2 = scmp.lt.s32.totalorder %s3108_s25, %s3108_s25 }
0x180d   :  { %3101 = vpow2.f32 %v2686_v56 }
0x180e   :  { %p3115_p3 = por %p3114_p2, %p3113_p1 }
0x1810   :  { %p3116_p4 = pnand %p3115_p3, %p3109_p0 }
0x1818   :  { %v3100_v55 = vpop.eup %3099 }
0x1819   :  { %2523 = vrot.lane.b32.xlu0 %v3100_v55, %s3132_s4 }
0x181a   :  { %v3102_v57 = vpop.eup %3101 }
0x181b   :  { %v2517_v58 = vadd.f32 1.0, %v3102_v57 }
0x181d   :  { %3103 = vrcp.f32 %v2517_v58 }
0x182a   :  { %v3104_v59 = vpop.eup %3103 }
0x182b   :  { %v2521_v62 = vmul.f32 %v3104_v59, %v2254_v33 }
0x188b   :  { %v2524_v60 = vpop.permute.xlu0 %2523 }
0x188c   :  { %v2526_v61 = vmul.f32 %v3104_v59, %v2524_v60 }
0x188e   :  { %2528 = vrot.lane.b32.xlu1 %v2526_v61, %s3133_s7 }
0x1900   :  { %v2529_v63 = vpop.permute.xlu1 %2528 }
0x1901   :  { %v2531_v0 = vadd.f32 %v2529_v63, %v2521_v62 }
0x1903   :  { %3105 = vtanh.f32 %v2531_v0 }
0x1910   :  { %v3106_v2 = vpop.eup %3105 }
0x1911   :  { %2534 = vrot.lane.b32.xlu0 %v3106_v2, %s3134_s8 }
0x1983   :  { %v2535_v3 = vpop.permute.xlu0 %2534 }
0x1984   :  { %v2537_v4 = vmul.f32 %v3104_v59, %v2535_v3 }
0x1986   :  { %2548 = vrot.lane.b32.xlu1 %v2537_v4, %s3135_s9 }
0x19f8   :  { %v2549_v5 = vpop.permute.xlu1 %2548 }
0x19f9   :  { %2970 = vmatmul.mubr.msk.f32.vlgmr.msra.gmra.mxu1 %vm56_vm0, %v2549_v5 }
0x1ab9   :  { %v2618_v16 = vpop.f32.mrf.mxu1 }
0x1aba   :  { %v2619_v43 = vadd.f32 %v2687_v6, %v2618_v16 }
0x1abb   :  { %v2971_v15 = vpop.f32.mrf.mxu1 }
0x1abc   :  { %v2622_v7 = vmax.f32 %v2619_v43, 0.0 }
0x1abe   :  { %2624 = vst.msk [vmem:[#allocation2] sm:$0x3] %vm2623_vm2, %v2622_v7 }
0x1abf   :  { %3119 = shalt.err (!%p3116_p4)
}
0x1ac0   :  { %2634 = dma.vmem_to_hbm [thread:$0]  %s2632_s24, 32, %s3617_s13, [#allocation3]  }
0x1ac1   :  { %3128 = dma.done.wait [#allocation3], 32  }
0x1ac2   :  { %3129 = vsyncadd [#allocation3], 4294967264 }
0x1ac3   :  { %2638 = vsyncpa [#allocation3], 1 }

</bundles_post_ra>
